<compile_context>
chip_gen: v7x
topology: tpu7x:2x2x1
jax: 0.10.0
libtpu: 0.0.40
codegen_flags: <defaults>
</compile_context>

<pallas_src>
import functools

import jax
import jax.numpy as jnp
from jax.experimental import pallas as pl
from jax.experimental.pallas import tpu as pltpu  # TPU backend assumed

# ---- Mamba2 hyperparameters (small, consistent with the module) -------------
D_MODEL = 32
D_STATE = 16
D_CONV = 4
EXPAND = 2
HEADDIM = 64                                   # mamba_ssm default headdim
D_INNER = EXPAND * D_MODEL                     # 64
NGROUPS = 1
NHEADS = D_INNER // HEADDIM                    # 1
CONV_DIM = D_INNER + 2 * NGROUPS * D_STATE     # 96
D_IN_PROJ = 2 * D_INNER + 2 * NGROUPS * D_STATE + NHEADS   # 161
EPS = 1e-5
NEG_SLOPE = 0.01                               # nn.LeakyReLU default slope

BATCH = 2
SEQLEN = 8
LANES = 128

assert NHEADS == 1, "kernel keeps per-head scalars as (1,1); generalize for NHEADS>1"

# ---- parameter-slab layout (rows x 128 lanes) --------------------------------
R_WZ = 0                            # rows [  0, 32): [w_z1 | w_z2]
R_XBCDT1 = R_WZ + D_MODEL           # rows [ 32, 64): [w_xbc | w_dt | 0]   (stage 1)
R_XBCDT2 = R_XBCDT1 + D_MODEL       # rows [ 64, 96): w_lin-folded version (stage 2)
R_OUTFOLD = R_XBCDT2 + D_MODEL      # rows [ 96,160): [w_out | w_fold | 0]
R_TAIL = R_OUTFOLD + D_INNER        # rows [160,168): conv_w(4), conv_b, misc, bias_z2, bias_xbcdt2
R_TOTAL = R_TAIL + 8                # 168 rows (multiple of 8)
# misc-row lane offsets
MISC_NORMW = 0                      # [0,64)   norm_w
MISC_BLIN = D_INNER                 # [64,96)  b_lin
MISC_DTB = D_INNER + D_MODEL        # 96       dt_bias
MISC_A = MISC_DTB + 1               # 97       -exp(A_log)
MISC_D = MISC_A + 1                 # 98       D


def _softplus(x):
    return jnp.where(x > 20.0, x, jnp.log1p(jnp.exp(x)))


def _silu(x):
    return x * (1.0 / (1.0 + jnp.exp(-x)))


# --------------------------- fused forward kernel ----------------------------
def fused_forward_kernel(x_ref, slab_ref, o_ref, *, batch, seqlen):
    M = batch * seqlen

    # ---- shared weights: static slices of the packed slab (loaded once) -----
    wz_both = slab_ref[R_WZ:R_WZ + D_MODEL, :]                   # (32,128)
    w_z1 = wz_both[:, :D_INNER]                                  # (32,64)
    w_z2 = wz_both[:, D_INNER:2 * D_INNER]                       # (32,64)
    w_xbcdt1 = slab_ref[R_XBCDT1:R_XBCDT1 + D_MODEL, :]          # (32,128)
    w_xbcdt2 = slab_ref[R_XBCDT2:R_XBCDT2 + D_MODEL, :]          # (32,128)
    outfold = slab_ref[R_OUTFOLD:R_OUTFOLD + D_INNER, :]         # (64,128)
    w_out = outfold[:, :D_MODEL]                                 # (64,32)
    w_fold = outfold[:, D_MODEL:2 * D_MODEL]                     # (64,32) = w_out @ w_lin
    tail = slab_ref[R_TAIL:R_TAIL + 8, :]                        # (8,128)
    cw = tail[0:D_CONV, :CONV_DIM]                               # (4,96)
    cb = tail[D_CONV:D_CONV + 1, :CONV_DIM]                      # (1,96)
    misc = tail[5:6, :]                                          # (1,128)
    norm_w = misc[:, MISC_NORMW:MISC_NORMW + D_INNER]            # (1,64)
    b_lin = misc[:, MISC_BLIN:MISC_BLIN + D_MODEL]               # (1,32)
    dt_bias = misc[:, MISC_DTB:MISC_DTB + 1]                     # (1,1)
    A = misc[:, MISC_A:MISC_A + 1]                               # (1,1), = -exp(A_log)
    Dp = misc[:, MISC_D:MISC_D + 1]                              # (1,1)
    bias_z2 = tail[6:7, :D_INNER]                                # (1,64) = b_lin @ w_z1
    bias_xbcdt2 = tail[7:8, :]                                   # (1,128) = b_lin @ w_xbcdt1

    # ---- static masks, built once and shared by both mamba2 calls -----------
    rid = jax.lax.broadcasted_iota(jnp.int32, (M, M), 0)   # output timestep t
    cid = jax.lax.broadcasted_iota(jnp.int32, (M, M), 1)   # source timestep s
    same_b = None
    for b in range(batch):        # static unroll (B is tiny); no int div needed
        blk = ((rid >= b * seqlen) & (rid < (b + 1) * seqlen)
               & (cid >= b * seqlen) & (cid < (b + 1) * seqlen))
        same_b = blk if same_b is None else (same_b | blk)
    causal = same_b & (cid <= rid)                      # block-diag lower tri (incl.)
    tril_f = jnp.where(causal, 1.0, 0.0)

    pos = jax.lax.broadcasted_iota(jnp.int32, (M, 1), 0)

    def _row_mask(d):
        # (M,1) mask: 1.0 where the row is >= d positions into its own sequence
        m = None
        for b in range(batch):
            ok = (pos >= b * seqlen + d) & (pos < (b + 1) * seqlen)
            m = ok if m is None else (m | ok)
        return jnp.where(m, 1.0, 0.0)

    scan_steps = []
    s = 1
    while s < seqlen:
        scan_steps.append(s)
        s *= 2
    seq_masks = {d: _row_mask(d)
                 for d in sorted(set(range(1, D_CONV)) | set(scan_steps))}

    def mamba2_block(u, w_z, w_xbcdt, bias_z, bias_xbcdt):
        """Mamba2 block on flattened (B*L, d_model) rows.
        Returns the gated-RMSNorm output (B*L, d_inner); caller applies out_proj."""
        # in_proj: z dot (64 lanes) + lane-dense xBC|dt dot (128 lanes, dt at lane 96)
        z = jnp.dot(u, w_z, preferred_element_type=jnp.float32)          # (M, 64)
        if bias_z is not None:
            z = z + bias_z
        xbcdt = jnp.dot(u, w_xbcdt, preferred_element_type=jnp.float32)  # (M, 128)
        if bias_xbcdt is not None:
            xbcdt = xbcdt + bias_xbcdt
        dt = _softplus(xbcdt[:, CONV_DIM:CONV_DIM + 1] + dt_bias)        # (M, 1)
        xBC = xbcdt[:, :CONV_DIM]                                        # (M, 96)

        # causal depthwise conv1d: sublane rolls (XLU) + sequence-boundary masks
        conv = xBC * cw[D_CONV - 1:D_CONV, :]
        for d in range(1, D_CONV):
            shifted = pltpu.roll(xBC, shift=d, axis=0)                   # row m <- m-d
            conv = conv + (shifted * seq_masks[d]) * cw[D_CONV - 1 - d:D_CONV - d, :]
        xBC_a = _silu(conv + cb)

        x = xBC_a[:, :D_INNER]                                           # (M, 64)
        Bm = xBC_a[:, D_INNER:D_INNER + D_STATE]                         # (M, 16)
        Cm = xBC_a[:, D_INNER + D_STATE:]                                # (M, 16)

        # quadratic SSD form (batched through the block-diagonal mask):
        #   y[t] = sum_{s<=t} exp(cum[t]-cum[s]) * (C[t].B[s]) * dt[s]*x[s] + D*x[t]
        # per-sequence inclusive cumsum of a = dt*A via masked Hillis-Steele (no MXU)
        a = dt * A                                                       # (M, 1), <= 0
        cum = a
        for d in scan_steps:
            cum = cum + pltpu.roll(cum, shift=d, axis=0) * seq_masks[d]

        cum_sq = jnp.broadcast_to(cum, (M, M))
        log_decay = jnp.where(causal, cum_sq - jnp.transpose(cum_sq), 0.0)
        decay = jnp.exp(log_decay) * tril_f                              # masked AFTER exp
        CB = jnp.einsum("td,sd->ts", Cm, Bm,
                        preferred_element_type=jnp.float32)              # (M, M)
        y = jnp.dot(CB * decay, dt * x,
                    preferred_element_type=jnp.float32) + Dp * x         # (M, 64)

        # gated RMSNorm (norm_before_gate=False): rmsnorm(y * silu(z)) * weight
        yz = y * _silu(z)
        var = jnp.mean(yz * yz, axis=-1, keepdims=True)
        return yz * jax.lax.rsqrt(var + EPS) * norm_w

    u0 = x_ref[...]                                                      # (M, d_model)

    # stage 1: mamba2 -> out_proj -> LeakyReLU.
    # TODO(synk): nn.Dropout(0.5) is identity here (eval mode); train-mode RNG
    # masking is not implemented.
    h = jnp.dot(mamba2_block(u0, w_z1, w_xbcdt1, None, None), w_out,
                preferred_element_type=jnp.float32)
    h = jnp.where(h >= 0.0, h, NEG_SLOPE * h)

    # stage 2: the first Linear is folded into this block's in_proj weights /
    # bias rows; its out_proj is folded with the final Linear (w_fold).
    o_ref[...] = (jnp.dot(mamba2_block(h, w_z2, w_xbcdt2, bias_z2, bias_xbcdt2),
                          w_fold, preferred_element_type=jnp.float32) + b_lin)


# ------------------- one-time parameter prep / packing -----------------------
def pack_params(p):
    """Fold + pack all weights into a single (168,128) f32 slab.  Runs ONCE,
    off the per-call hot path (only re-run when the parameters change)."""
    hi = jax.lax.Precision.HIGHEST
    w_in = p["w_in"]
    w_z1 = w_in[:, :D_INNER]                                    # (32,64)
    w_xbc = w_in[:, D_INNER:D_INNER + CONV_DIM]                 # (32,96)
    w_dt_col = w_in[:, D_INNER + CONV_DIM:]                     # (32,1)
    w_xbcdt1 = jnp.concatenate(
        [w_xbc, w_dt_col,
         jnp.zeros((D_MODEL, LANES - CONV_DIM - NHEADS), jnp.float32)], axis=1)

    w_lin, b_lin = p["w_lin"], p["b_lin"]
    # Fold the first Linear (+ eval-mode Dropout = id) into the second in_proj.
    w_z2 = jnp.dot(w_lin, w_z1, precision=hi)                   # (32,64)
    w_xbcdt2 = jnp.dot(w_lin, w_xbcdt1, precision=hi)           # (32,128)
    bias_z2 = jnp.dot(b_lin, w_z1, precision=hi)                # (1,64)
    bias_xbcdt2 = jnp.dot(b_lin, w_xbcdt1, precision=hi)        # (1,128)
    # Fold the second out_proj with the final Linear.
    w_fold = jnp.dot(p["w_out"], w_lin, precision=hi)           # (64,32)

    def pad_lanes(a):
        return jnp.pad(a, ((0, 0), (0, LANES - a.shape[1])))

    misc = jnp.concatenate(
        [p["norm_w"], p["b_lin"], p["dt_bias"], -jnp.exp(p["A_log"]), p["D"]],
        axis=1)                                                 # (1,99)

    rows = [
        jnp.concatenate([w_z1, w_z2], axis=1),                        # (32,128)
        w_xbcdt1,                                                     # (32,128)
        w_xbcdt2,                                                     # (32,128)
        pad_lanes(jnp.concatenate([p["w_out"], w_fold], axis=1)),     # (64,128)
        pad_lanes(p["conv_w"]),                                       # (4,128)
        pad_lanes(p["conv_b"]),                                       # (1,128)
        pad_lanes(misc),                                              # (1,128)
        pad_lanes(bias_z2),                                           # (1,128)
        bias_xbcdt2,                                                  # (1,128)
    ]
    slab = jnp.concatenate(rows, axis=0)
    assert slab.shape == (R_TOTAL, LANES)
    return slab


# --------------------------- wrapper (one pallas_call) -----------------------
@jax.jit
def self_supervised_mamba2_forward(x, slab):
    B, L, _ = x.shape
    out = pl.pallas_call(
        functools.partial(fused_forward_kernel, batch=B, seqlen=L),
        out_shape=jax.ShapeDtypeStruct((B * L, D_MODEL), jnp.float32),
    )(x.reshape(B * L, D_MODEL), slab)
    return out.reshape(B, L, D_MODEL)


def init_params(key):
    ks = jax.random.split(key, 8)
    return {
        "w_in":   0.02 * jax.random.normal(ks[0], (D_MODEL, D_IN_PROJ), jnp.float32),
        "conv_w": 0.10 * jax.random.normal(ks[1], (D_CONV, CONV_DIM), jnp.float32),
        "conv_b": 0.01 * jax.random.normal(ks[2], (1, CONV_DIM), jnp.float32),
        "dt_bias": 0.10 * jax.random.normal(ks[3], (1, NHEADS), jnp.float32),
        "A_log":  jnp.log(jax.random.uniform(ks[4], (1, NHEADS), jnp.float32,
                                             minval=1.0, maxval=16.0)),
        "D":      jnp.ones((1, NHEADS), jnp.float32),
        "norm_w": jnp.ones((1, D_INNER), jnp.float32),
        "w_out":  0.02 * jax.random.normal(ks[5], (D_INNER, D_MODEL), jnp.float32),
        "w_lin":  0.02 * jax.random.normal(ks[6], (D_MODEL, D_MODEL), jnp.float32),
        "b_lin":  0.01 * jax.random.normal(ks[7], (1, D_MODEL), jnp.float32),
    }


# ---------------- pure-JAX reference (sequential recurrence) -----------------
def _mamba2_ref(u, p):
    zxbcdt = u @ p["w_in"]
    z = zxbcdt[:, :D_INNER]
    xBC = zxbcdt[:, D_INNER:D_INNER + CONV_DIM]
    dt = _softplus(zxbcdt[:, D_INNER + CONV_DIM:] + p["dt_bias"])        # (L, 1)
    L = u.shape[0]
    xp = jnp.concatenate([jnp.zeros((D_CONV - 1, CONV_DIM), jnp.float32), xBC], 0)
    conv = p["conv_b"]
    for k in range(D_CONV):
        conv = conv + p["conv_w"][k][None, :] * xp[k:k + L]
    xBC = _silu(conv)
    x = xBC[:, :D_INNER]
    Bm = xBC[:, D_INNER:D_INNER + D_STATE]
    Cm = xBC[:, D_INNER + D_STATE:]
    A = -jnp.exp(p["A_log"])[0, 0]
    h = jnp.zeros((D_STATE, D_INNER), jnp.float32)
    ys = []
    for t in range(L):
        h = h * jnp.exp(dt[t, 0] * A) + Bm[t][:, None] * (dt[t, 0] * x[t])[None, :]
        ys.append(Cm[t] @ h + p["D"][0, 0] * x[t])
    y = jnp.stack(ys)
    yz = y * _silu(z)
    y = yz * jax.lax.rsqrt(jnp.mean(yz * yz, -1, keepdims=True) + EPS) * p["norm_w"]
    return y @ p["w_out"]


def _forward_ref(x, p):
    h = jnp.stack([_mamba2_ref(x[b], p) for b in range(x.shape[0])])
    h = jnp.where(h >= 0.0, h, NEG_SLOPE * h)
    h = h @ p["w_lin"] + p["b_lin"]
    h = jnp.stack([_mamba2_ref(h[b], p) for b in range(x.shape[0])])
    return h @ p["w_lin"] + p["b_lin"]


if __name__ == "__main__":
    key = jax.random.PRNGKey(0)
    k_params, k_x = jax.random.split(key)
    params = init_params(k_params)
    slab = jax.block_until_ready(pack_params(params))   # one-time prep, off hot path
    x = jax.random.normal(k_x, (BATCH, SEQLEN, D_MODEL), jnp.float32)

    out = jax.block_until_ready(self_supervised_mamba2_forward(x, slab))
    assert out.shape == (BATCH, SEQLEN, D_MODEL)
    assert bool(jnp.all(jnp.isfinite(out)))

    ref = _forward_ref(x, params)
    err = float(jnp.max(jnp.abs(out - ref)))
    assert err < 1e-3, f"mismatch vs reference recurrence: {err}"
    print("KERNEL_OK")
</pallas_src>

<mosaic_0001>
module attributes {stable_mosaic.version = 11 : i64} {
  func.func @fused_forward_kernel(%arg0: memref<16x32xf32, #tpu.memory_space<vmem>>, %arg1: memref<168x128xf32, #tpu.memory_space<vmem>>, %arg2: memref<16x32xf32, #tpu.memory_space<vmem>>) attributes {dimension_semantics = [], scalar_prefetch = 0 : i64, scratch_operands = 0 : i64, tpu.core_type = #tpu.core_type<tc>} {
    %c0 = arith.constant 0 : index
    %c0_0 = arith.constant 0 : index
    %0 = vector.load %arg1[%c0, %c0_0] : memref<168x128xf32, #tpu.memory_space<vmem>>, vector<32x128xf32>
    %1 = vector.extract_strided_slice %0 {offsets = [0, 0], sizes = [32, 64], strides = [1, 1]} : vector<32x128xf32> to vector<32x64xf32>
    %2 = vector.extract_strided_slice %0 {offsets = [0, 64], sizes = [32, 64], strides = [1, 1]} : vector<32x128xf32> to vector<32x64xf32>
    %c32 = arith.constant 32 : index
    %c0_1 = arith.constant 0 : index
    %3 = vector.load %arg1[%c32, %c0_1] : memref<168x128xf32, #tpu.memory_space<vmem>>, vector<32x128xf32>
    %c64 = arith.constant 64 : index
    %c0_2 = arith.constant 0 : index
    %4 = vector.load %arg1[%c64, %c0_2] : memref<168x128xf32, #tpu.memory_space<vmem>>, vector<32x128xf32>
    %c96 = arith.constant 96 : index
    %c0_3 = arith.constant 0 : index
    %5 = vector.load %arg1[%c96, %c0_3] : memref<168x128xf32, #tpu.memory_space<vmem>>, vector<64x128xf32>
    %6 = vector.extract_strided_slice %5 {offsets = [0, 0], sizes = [64, 32], strides = [1, 1]} : vector<64x128xf32> to vector<64x32xf32>
    %7 = vector.extract_strided_slice %5 {offsets = [0, 32], sizes = [64, 32], strides = [1, 1]} : vector<64x128xf32> to vector<64x32xf32>
    %c160 = arith.constant 160 : index
    %c0_4 = arith.constant 0 : index
    %8 = vector.load %arg1[%c160, %c0_4] : memref<168x128xf32, #tpu.memory_space<vmem>>, vector<8x128xf32>
    %9 = vector.extract_strided_slice %8 {offsets = [0, 0], sizes = [4, 96], strides = [1, 1]} : vector<8x128xf32> to vector<4x96xf32>
    %10 = vector.extract_strided_slice %8 {offsets = [4, 0], sizes = [1, 96], strides = [1, 1]} : vector<8x128xf32> to vector<1x96xf32>
    %11 = vector.extract_strided_slice %8 {offsets = [5, 0], sizes = [1, 128], strides = [1, 1]} : vector<8x128xf32> to vector<1x128xf32>
    %12 = vector.extract_strided_slice %11 {offsets = [0, 0], sizes = [1, 64], strides = [1, 1]} : vector<1x128xf32> to vector<1x64xf32>
    %13 = vector.extract_strided_slice %11 {offsets = [0, 64], sizes = [1, 32], strides = [1, 1]} : vector<1x128xf32> to vector<1x32xf32>
    %14 = vector.extract_strided_slice %11 {offsets = [0, 96], sizes = [1, 1], strides = [1, 1]} : vector<1x128xf32> to vector<1x1xf32>
    %15 = vector.extract_strided_slice %11 {offsets = [0, 97], sizes = [1, 1], strides = [1, 1]} : vector<1x128xf32> to vector<1x1xf32>
    %16 = vector.extract_strided_slice %11 {offsets = [0, 98], sizes = [1, 1], strides = [1, 1]} : vector<1x128xf32> to vector<1x1xf32>
    %17 = vector.extract_strided_slice %8 {offsets = [6, 0], sizes = [1, 64], strides = [1, 1]} : vector<8x128xf32> to vector<1x64xf32>
    %18 = vector.extract_strided_slice %8 {offsets = [7, 0], sizes = [1, 128], strides = [1, 1]} : vector<8x128xf32> to vector<1x128xf32>
    %19 = tpu.iota {dimensions = array<i32: 0>} : vector<16x16xi32>
    %20 = tpu.iota {dimensions = array<i32: 1>} : vector<16x16xi32>
    %c0_i32 = arith.constant 0 : i32
    %21 = vector.broadcast %c0_i32 : i32 to vector<16x16xi32>
    %22 = arith.cmpi sge, %19, %21 : vector<16x16xi32>
    %c8_i32 = arith.constant 8 : i32
    %23 = vector.broadcast %c8_i32 : i32 to vector<16x16xi32>
    %24 = arith.cmpi slt, %19, %23 : vector<16x16xi32>
    %25 = arith.andi %22, %24 : vector<16x16xi1>
    %c0_i32_5 = arith.constant 0 : i32
    %26 = vector.broadcast %c0_i32_5 : i32 to vector<16x16xi32>
    %27 = arith.cmpi sge, %20, %26 : vector<16x16xi32>
    %28 = arith.andi %25, %27 : vector<16x16xi1>
    %c8_i32_6 = arith.constant 8 : i32
    %29 = vector.broadcast %c8_i32_6 : i32 to vector<16x16xi32>
    %30 = arith.cmpi slt, %20, %29 : vector<16x16xi32>
    %31 = arith.andi %28, %30 : vector<16x16xi1>
    %c8_i32_7 = arith.constant 8 : i32
    %32 = vector.broadcast %c8_i32_7 : i32 to vector<16x16xi32>
    %33 = arith.cmpi sge, %19, %32 : vector<16x16xi32>
    %c16_i32 = arith.constant 16 : i32
    %34 = vector.broadcast %c16_i32 : i32 to vector<16x16xi32>
    %35 = arith.cmpi slt, %19, %34 : vector<16x16xi32>
    %36 = arith.andi %33, %35 : vector<16x16xi1>
    %c8_i32_8 = arith.constant 8 : i32
    %37 = vector.broadcast %c8_i32_8 : i32 to vector<16x16xi32>
    %38 = arith.cmpi sge, %20, %37 : vector<16x16xi32>
    %39 = arith.andi %36, %38 : vector<16x16xi1>
    %c16_i32_9 = arith.constant 16 : i32
    %40 = vector.broadcast %c16_i32_9 : i32 to vector<16x16xi32>
    %41 = arith.cmpi slt, %20, %40 : vector<16x16xi32>
    %42 = arith.andi %39, %41 : vector<16x16xi1>
    %43 = arith.ori %31, %42 : vector<16x16xi1>
    %44 = arith.cmpi sle, %20, %19 : vector<16x16xi32>
    %45 = arith.andi %43, %44 : vector<16x16xi1>
    %cst = arith.constant 1.000000e+00 : f32
    %cst_10 = arith.constant 0.000000e+00 : f32
    %46 = vector.broadcast %cst : f32 to vector<16x16xf32>
    %47 = vector.broadcast %cst_10 : f32 to vector<16x16xf32>
    %48 = arith.select %45, %46, %47 : vector<16x16xi1>, vector<16x16xf32>
    %49 = tpu.iota {dimensions = array<i32: 0>} : vector<16x1xi32>
    %c1_i32 = arith.constant 1 : i32
    %50 = vector.broadcast %c1_i32 : i32 to vector<16x1xi32>
    %51 = arith.cmpi sge, %49, %50 : vector<16x1xi32>
    %c8_i32_11 = arith.constant 8 : i32
    %52 = vector.broadcast %c8_i32_11 : i32 to vector<16x1xi32>
    %53 = arith.cmpi slt, %49, %52 : vector<16x1xi32>
    %54 = arith.andi %51, %53 : vector<16x1xi1>
    %c9_i32 = arith.constant 9 : i32
    %55 = vector.broadcast %c9_i32 : i32 to vector<16x1xi32>
    %56 = arith.cmpi sge, %49, %55 : vector<16x1xi32>
    %c16_i32_12 = arith.constant 16 : i32
    %57 = vector.broadcast %c16_i32_12 : i32 to vector<16x1xi32>
    %58 = arith.cmpi slt, %49, %57 : vector<16x1xi32>
    %59 = arith.andi %56, %58 : vector<16x1xi1>
    %60 = arith.ori %54, %59 : vector<16x1xi1>
    %cst_13 = arith.constant 1.000000e+00 : f32
    %cst_14 = arith.constant 0.000000e+00 : f32
    %61 = vector.broadcast %cst_13 : f32 to vector<16x1xf32>
    %62 = vector.broadcast %cst_14 : f32 to vector<16x1xf32>
    %63 = arith.select %60, %61, %62 : vector<16x1xi1>, vector<16x1xf32>
    %c2_i32 = arith.constant 2 : i32
    %64 = vector.broadcast %c2_i32 : i32 to vector<16x1xi32>
    %65 = arith.cmpi sge, %49, %64 : vector<16x1xi32>
    %c8_i32_15 = arith.constant 8 : i32
    %66 = vector.broadcast %c8_i32_15 : i32 to vector<16x1xi32>
    %67 = arith.cmpi slt, %49, %66 : vector<16x1xi32>
    %68 = arith.andi %65, %67 : vector<16x1xi1>
    %c10_i32 = arith.constant 10 : i32
    %69 = vector.broadcast %c10_i32 : i32 to vector<16x1xi32>
    %70 = arith.cmpi sge, %49, %69 : vector<16x1xi32>
    %c16_i32_16 = arith.constant 16 : i32
    %71 = vector.broadcast %c16_i32_16 : i32 to vector<16x1xi32>
    %72 = arith.cmpi slt, %49, %71 : vector<16x1xi32>
    %73 = arith.andi %70, %72 : vector<16x1xi1>
    %74 = arith.ori %68, %73 : vector<16x1xi1>
    %cst_17 = arith.constant 1.000000e+00 : f32
    %cst_18 = arith.constant 0.000000e+00 : f32
    %75 = vector.broadcast %cst_17 : f32 to vector<16x1xf32>
    %76 = vector.broadcast %cst_18 : f32 to vector<16x1xf32>
    %77 = arith.select %74, %75, %76 : vector<16x1xi1>, vector<16x1xf32>
    %c3_i32 = arith.constant 3 : i32
    %78 = vector.broadcast %c3_i32 : i32 to vector<16x1xi32>
    %79 = arith.cmpi sge, %49, %78 : vector<16x1xi32>
    %c8_i32_19 = arith.constant 8 : i32
    %80 = vector.broadcast %c8_i32_19 : i32 to vector<16x1xi32>
    %81 = arith.cmpi slt, %49, %80 : vector<16x1xi32>
    %82 = arith.andi %79, %81 : vector<16x1xi1>
    %c11_i32 = arith.constant 11 : i32
    %83 = vector.broadcast %c11_i32 : i32 to vector<16x1xi32>
    %84 = arith.cmpi sge, %49, %83 : vector<16x1xi32>
    %c16_i32_20 = arith.constant 16 : i32
    %85 = vector.broadcast %c16_i32_20 : i32 to vector<16x1xi32>
    %86 = arith.cmpi slt, %49, %85 : vector<16x1xi32>
    %87 = arith.andi %84, %86 : vector<16x1xi1>
    %88 = arith.ori %82, %87 : vector<16x1xi1>
    %cst_21 = arith.constant 1.000000e+00 : f32
    %cst_22 = arith.constant 0.000000e+00 : f32
    %89 = vector.broadcast %cst_21 : f32 to vector<16x1xf32>
    %90 = vector.broadcast %cst_22 : f32 to vector<16x1xf32>
    %91 = arith.select %88, %89, %90 : vector<16x1xi1>, vector<16x1xf32>
    %c4_i32 = arith.constant 4 : i32
    %92 = vector.broadcast %c4_i32 : i32 to vector<16x1xi32>
    %93 = arith.cmpi sge, %49, %92 : vector<16x1xi32>
    %c8_i32_23 = arith.constant 8 : i32
    %94 = vector.broadcast %c8_i32_23 : i32 to vector<16x1xi32>
    %95 = arith.cmpi slt, %49, %94 : vector<16x1xi32>
    %96 = arith.andi %93, %95 : vector<16x1xi1>
    %c12_i32 = arith.constant 12 : i32
    %97 = vector.broadcast %c12_i32 : i32 to vector<16x1xi32>
    %98 = arith.cmpi sge, %49, %97 : vector<16x1xi32>
    %c16_i32_24 = arith.constant 16 : i32
    %99 = vector.broadcast %c16_i32_24 : i32 to vector<16x1xi32>
    %100 = arith.cmpi slt, %49, %99 : vector<16x1xi32>
    %101 = arith.andi %98, %100 : vector<16x1xi1>
    %102 = arith.ori %96, %101 : vector<16x1xi1>
    %cst_25 = arith.constant 1.000000e+00 : f32
    %cst_26 = arith.constant 0.000000e+00 : f32
    %103 = vector.broadcast %cst_25 : f32 to vector<16x1xf32>
    %104 = vector.broadcast %cst_26 : f32 to vector<16x1xf32>
    %105 = arith.select %102, %103, %104 : vector<16x1xi1>, vector<16x1xf32>
    %c0_27 = arith.constant 0 : index
    %c0_28 = arith.constant 0 : index
    %106 = vector.load %arg0[%c0_27, %c0_28] : memref<16x32xf32, #tpu.memory_space<vmem>>, vector<16x32xf32>
    %cst_29 = arith.constant dense<0.000000e+00> : vector<16x64xf32>
    %107 = tpu.matmul %106, %1, %cst_29 {dimension_numbers = #tpu.dot_dimension_numbers<[1], [0], [0], [1], [0, 0, 1, 1], [], []>} : vector<16x32xf32>, vector<32x64xf32>, vector<16x64xf32> -> vector<16x64xf32>
    %cst_30 = arith.constant dense<0.000000e+00> : vector<16x128xf32>
    %108 = tpu.matmul %106, %3, %cst_30 {dimension_numbers = #tpu.dot_dimension_numbers<[1], [0], [0], [1], [0, 0, 1, 1], [], []>} : vector<16x32xf32>, vector<32x128xf32>, vector<16x128xf32> -> vector<16x128xf32>
    %109 = vector.extract_strided_slice %108 {offsets = [0, 96], sizes = [16, 1], strides = [1, 1]} : vector<16x128xf32> to vector<16x1xf32>
    %110 = vector.broadcast %14 : vector<1x1xf32> to vector<16x1xf32>
    %111 = arith.addf %109, %110 : vector<16x1xf32>
    %cst_31 = arith.constant 2.000000e+01 : f32
    %112 = vector.broadcast %cst_31 : f32 to vector<16x1xf32>
    %113 = arith.cmpf ogt, %111, %112 : vector<16x1xf32>
    %114 = math.exp %111 : vector<16x1xf32>
    %115 = math.log1p %114 : vector<16x1xf32>
    %116 = arith.select %113, %111, %115 : vector<16x1xi1>, vector<16x1xf32>
    %117 = vector.extract_strided_slice %108 {offsets = [0, 0], sizes = [16, 96], strides = [1, 1]} : vector<16x128xf32> to vector<16x96xf32>
    %118 = vector.extract_strided_slice %9 {offsets = [3, 0], sizes = [1, 96], strides = [1, 1]} : vector<4x96xf32> to vector<1x96xf32>
    %119 = vector.broadcast %118 : vector<1x96xf32> to vector<16x96xf32>
    %120 = arith.mulf %117, %119 : vector<16x96xf32>
    %c1_i32_32 = arith.constant 1 : i32
    %121 = tpu.dynamic_rotate %117 by %c1_i32_32 dim 0 : vector<16x96xf32>, i32 -> vector<16x96xf32>
    %122 = vector.broadcast %63 : vector<16x1xf32> to vector<16x96xf32>
    %123 = arith.mulf %121, %122 : vector<16x96xf32>
    %124 = vector.extract_strided_slice %9 {offsets = [2, 0], sizes = [1, 96], strides = [1, 1]} : vector<4x96xf32> to vector<1x96xf32>
    %125 = vector.broadcast %124 : vector<1x96xf32> to vector<16x96xf32>
    %126 = arith.mulf %123, %125 : vector<16x96xf32>
    %127 = arith.addf %120, %126 : vector<16x96xf32>
    %c2_i32_33 = arith.constant 2 : i32
    %128 = tpu.dynamic_rotate %117 by %c2_i32_33 dim 0 : vector<16x96xf32>, i32 -> vector<16x96xf32>
    %129 = vector.broadcast %77 : vector<16x1xf32> to vector<16x96xf32>
    %130 = arith.mulf %128, %129 : vector<16x96xf32>
    %131 = vector.extract_strided_slice %9 {offsets = [1, 0], sizes = [1, 96], strides = [1, 1]} : vector<4x96xf32> to vector<1x96xf32>
    %132 = vector.broadcast %131 : vector<1x96xf32> to vector<16x96xf32>
    %133 = arith.mulf %130, %132 : vector<16x96xf32>
    %134 = arith.addf %127, %133 : vector<16x96xf32>
    %c3_i32_34 = arith.constant 3 : i32
    %135 = tpu.dynamic_rotate %117 by %c3_i32_34 dim 0 : vector<16x96xf32>, i32 -> vector<16x96xf32>
    %136 = vector.broadcast %91 : vector<16x1xf32> to vector<16x96xf32>
    %137 = arith.mulf %135, %136 : vector<16x96xf32>
    %138 = vector.extract_strided_slice %9 {offsets = [0, 0], sizes = [1, 96], strides = [1, 1]} : vector<4x96xf32> to vector<1x96xf32>
    %139 = vector.broadcast %138 : vector<1x96xf32> to vector<16x96xf32>
    %140 = arith.mulf %137, %139 : vector<16x96xf32>
    %141 = arith.addf %134, %140 : vector<16x96xf32>
    %142 = vector.broadcast %10 : vector<1x96xf32> to vector<16x96xf32>
    %143 = arith.addf %141, %142 : vector<16x96xf32>
    %cst_35 = arith.constant 0.000000e+00 : f32
    %144 = vector.broadcast %cst_35 : f32 to vector<16x96xf32>
    %145 = arith.subf %144, %143 : vector<16x96xf32>
    %146 = math.exp %145 : vector<16x96xf32>
    %cst_36 = arith.constant 1.000000e+00 : f32
    %147 = vector.broadcast %cst_36 : f32 to vector<16x96xf32>
    %148 = arith.addf %147, %146 : vector<16x96xf32>
    %cst_37 = arith.constant 1.000000e+00 : f32
    %149 = vector.broadcast %cst_37 : f32 to vector<16x96xf32>
    %150 = arith.divf %149, %148 : vector<16x96xf32>
    %151 = arith.mulf %143, %150 : vector<16x96xf32>
    %152 = vector.extract_strided_slice %151 {offsets = [0, 0], sizes = [16, 64], strides = [1, 1]} : vector<16x96xf32> to vector<16x64xf32>
    %153 = vector.extract_strided_slice %151 {offsets = [0, 64], sizes = [16, 16], strides = [1, 1]} : vector<16x96xf32> to vector<16x16xf32>
    %154 = vector.extract_strided_slice %151 {offsets = [0, 80], sizes = [16, 16], strides = [1, 1]} : vector<16x96xf32> to vector<16x16xf32>
    %155 = vector.broadcast %15 : vector<1x1xf32> to vector<16x1xf32>
    %156 = arith.mulf %116, %155 : vector<16x1xf32>
    %c1_i32_38 = arith.constant 1 : i32
    %157 = tpu.dynamic_rotate %156 by %c1_i32_38 dim 0 : vector<16x1xf32>, i32 -> vector<16x1xf32>
    %158 = arith.mulf %157, %63 : vector<16x1xf32>
    %159 = arith.addf %156, %158 : vector<16x1xf32>
    %c2_i32_39 = arith.constant 2 : i32
    %160 = tpu.dynamic_rotate %159 by %c2_i32_39 dim 0 : vector<16x1xf32>, i32 -> vector<16x1xf32>
    %161 = arith.mulf %160, %77 : vector<16x1xf32>
    %162 = arith.addf %159, %161 : vector<16x1xf32>
    %c4_i32_40 = arith.constant 4 : i32
    %163 = tpu.dynamic_rotate %162 by %c4_i32_40 dim 0 : vector<16x1xf32>, i32 -> vector<16x1xf32>
    %164 = arith.mulf %163, %105 : vector<16x1xf32>
    %165 = arith.addf %162, %164 : vector<16x1xf32>
    %166 = vector.shape_cast %165 : vector<16x1xf32> to vector<16x1xf32>
    %167 = vector.broadcast %166 : vector<16x1xf32> to vector<16x16xf32>
    %168 = tpu.transpose %167, [1, 0] : vector<16x16xf32> -> vector<16x16xf32>
    %169 = arith.subf %167, %168 : vector<16x16xf32>
    %cst_41 = arith.constant 0.000000e+00 : f32
    %170 = vector.broadcast %cst_41 : f32 to vector<16x16xf32>
    %171 = arith.select %45, %169, %170 : vector<16x16xi1>, vector<16x16xf32>
    %172 = math.exp %171 : vector<16x16xf32>
    %173 = arith.mulf %172, %48 : vector<16x16xf32>
    "tpu.trace_start"() <{level = 10 : i32, message = "td,sd->ts"}> : () -> ()
    %cst_42 = arith.constant dense<0.000000e+00> : vector<16x16xf32>
    %174 = tpu.matmul %154, %153, %cst_42 {dimension_numbers = #tpu.dot_dimension_numbers<[1], [1], [0], [0], [0, 0, 1, 0], [], []>} : vector<16x16xf32>, vector<16x16xf32>, vector<16x16xf32> -> vector<16x16xf32>
    "tpu.trace_stop"() : () -> ()
    %175 = arith.mulf %174, %173 : vector<16x16xf32>
    %176 = vector.broadcast %116 : vector<16x1xf32> to vector<16x64xf32>
    %177 = arith.mulf %176, %152 : vector<16x64xf32>
    %cst_43 = arith.constant dense<0.000000e+00> : vector<16x64xf32>
    %178 = tpu.matmul %175, %177, %cst_43 {dimension_numbers = #tpu.dot_dimension_numbers<[1], [0], [0], [1], [0, 0, 1, 1], [], []>} : vector<16x16xf32>, vector<16x64xf32>, vector<16x64xf32> -> vector<16x64xf32>
    %179 = vector.broadcast %16 : vector<1x1xf32> to vector<16x64xf32>
    %180 = arith.mulf %179, %152 : vector<16x64xf32>
    %181 = arith.addf %178, %180 : vector<16x64xf32>
    %cst_44 = arith.constant 0.000000e+00 : f32
    %182 = vector.broadcast %cst_44 : f32 to vector<16x64xf32>
    %183 = arith.subf %182, %107 : vector<16x64xf32>
    %184 = math.exp %183 : vector<16x64xf32>
    %cst_45 = arith.constant 1.000000e+00 : f32
    %185 = vector.broadcast %cst_45 : f32 to vector<16x64xf32>
    %186 = arith.addf %185, %184 : vector<16x64xf32>
    %cst_46 = arith.constant 1.000000e+00 : f32
    %187 = vector.broadcast %cst_46 : f32 to vector<16x64xf32>
    %188 = arith.divf %187, %186 : vector<16x64xf32>
    %189 = arith.mulf %107, %188 : vector<16x64xf32>
    %190 = arith.mulf %181, %189 : vector<16x64xf32>
    %191 = arith.mulf %190, %190 : vector<16x64xf32>
    %cst_47 = arith.constant dense<0.000000e+00> : vector<16xf32>
    %192 = vector.multi_reduction <add>, %191, %cst_47 [1] : vector<16x64xf32> to vector<16xf32>
    %193 = vector.shape_cast %192 : vector<16xf32> to vector<16x1xf32>
    %cst_48 = arith.constant 6.400000e+01 : f32
    %194 = vector.broadcast %cst_48 : f32 to vector<16x1xf32>
    %195 = arith.divf %193, %194 : vector<16x1xf32>
    %cst_49 = arith.constant 9.99999974E-6 : f32
    %196 = vector.broadcast %cst_49 : f32 to vector<16x1xf32>
    %197 = arith.addf %195, %196 : vector<16x1xf32>
    %198 = math.rsqrt %197 : vector<16x1xf32>
    %199 = vector.broadcast %198 : vector<16x1xf32> to vector<16x64xf32>
    %200 = arith.mulf %190, %199 : vector<16x64xf32>
    %201 = vector.broadcast %12 : vector<1x64xf32> to vector<16x64xf32>
    %202 = arith.mulf %200, %201 : vector<16x64xf32>
    %cst_50 = arith.constant dense<0.000000e+00> : vector<16x32xf32>
    %203 = tpu.matmul %202, %6, %cst_50 {dimension_numbers = #tpu.dot_dimension_numbers<[1], [0], [0], [1], [0, 0, 1, 1], [], []>} : vector<16x64xf32>, vector<64x32xf32>, vector<16x32xf32> -> vector<16x32xf32>
    %cst_51 = arith.constant 0.000000e+00 : f32
    %204 = vector.broadcast %cst_51 : f32 to vector<16x32xf32>
    %205 = arith.cmpf oge, %203, %204 : vector<16x32xf32>
    %cst_52 = arith.constant 0.00999999977 : f32
    %206 = vector.broadcast %cst_52 : f32 to vector<16x32xf32>
    %207 = arith.mulf %206, %203 : vector<16x32xf32>
    %208 = arith.select %205, %203, %207 : vector<16x32xi1>, vector<16x32xf32>
    %cst_53 = arith.constant dense<0.000000e+00> : vector<16x64xf32>
    %209 = tpu.matmul %208, %2, %cst_53 {dimension_numbers = #tpu.dot_dimension_numbers<[1], [0], [0], [1], [0, 0, 1, 1], [], []>} : vector<16x32xf32>, vector<32x64xf32>, vector<16x64xf32> -> vector<16x64xf32>
    %210 = vector.broadcast %17 : vector<1x64xf32> to vector<16x64xf32>
    %211 = arith.addf %209, %210 : vector<16x64xf32>
    %cst_54 = arith.constant dense<0.000000e+00> : vector<16x128xf32>
    %212 = tpu.matmul %208, %4, %cst_54 {dimension_numbers = #tpu.dot_dimension_numbers<[1], [0], [0], [1], [0, 0, 1, 1], [], []>} : vector<16x32xf32>, vector<32x128xf32>, vector<16x128xf32> -> vector<16x128xf32>
    %213 = vector.broadcast %18 : vector<1x128xf32> to vector<16x128xf32>
    %214 = arith.addf %212, %213 : vector<16x128xf32>
    %215 = vector.extract_strided_slice %214 {offsets = [0, 96], sizes = [16, 1], strides = [1, 1]} : vector<16x128xf32> to vector<16x1xf32>
    %216 = vector.broadcast %14 : vector<1x1xf32> to vector<16x1xf32>
    %217 = arith.addf %215, %216 : vector<16x1xf32>
    %cst_55 = arith.constant 2.000000e+01 : f32
    %218 = vector.broadcast %cst_55 : f32 to vector<16x1xf32>
    %219 = arith.cmpf ogt, %217, %218 : vector<16x1xf32>
    %220 = math.exp %217 : vector<16x1xf32>
    %221 = math.log1p %220 : vector<16x1xf32>
    %222 = arith.select %219, %217, %221 : vector<16x1xi1>, vector<16x1xf32>
    %223 = vector.extract_strided_slice %214 {offsets = [0, 0], sizes = [16, 96], strides = [1, 1]} : vector<16x128xf32> to vector<16x96xf32>
    %224 = vector.extract_strided_slice %9 {offsets = [3, 0], sizes = [1, 96], strides = [1, 1]} : vector<4x96xf32> to vector<1x96xf32>
    %225 = vector.broadcast %224 : vector<1x96xf32> to vector<16x96xf32>
    %226 = arith.mulf %223, %225 : vector<16x96xf32>
    %c1_i32_56 = arith.constant 1 : i32
    %227 = tpu.dynamic_rotate %223 by %c1_i32_56 dim 0 : vector<16x96xf32>, i32 -> vector<16x96xf32>
    %228 = vector.broadcast %63 : vector<16x1xf32> to vector<16x96xf32>
    %229 = arith.mulf %227, %228 : vector<16x96xf32>
    %230 = vector.extract_strided_slice %9 {offsets = [2, 0], sizes = [1, 96], strides = [1, 1]} : vector<4x96xf32> to vector<1x96xf32>
    %231 = vector.broadcast %230 : vector<1x96xf32> to vector<16x96xf32>
    %232 = arith.mulf %229, %231 : vector<16x96xf32>
    %233 = arith.addf %226, %232 : vector<16x96xf32>
    %c2_i32_57 = arith.constant 2 : i32
    %234 = tpu.dynamic_rotate %223 by %c2_i32_57 dim 0 : vector<16x96xf32>, i32 -> vector<16x96xf32>
    %235 = vector.broadcast %77 : vector<16x1xf32> to vector<16x96xf32>
    %236 = arith.mulf %234, %235 : vector<16x96xf32>
    %237 = vector.extract_strided_slice %9 {offsets = [1, 0], sizes = [1, 96], strides = [1, 1]} : vector<4x96xf32> to vector<1x96xf32>
    %238 = vector.broadcast %237 : vector<1x96xf32> to vector<16x96xf32>
    %239 = arith.mulf %236, %238 : vector<16x96xf32>
    %240 = arith.addf %233, %239 : vector<16x96xf32>
    %c3_i32_58 = arith.constant 3 : i32
    %241 = tpu.dynamic_rotate %223 by %c3_i32_58 dim 0 : vector<16x96xf32>, i32 -> vector<16x96xf32>
    %242 = vector.broadcast %91 : vector<16x1xf32> to vector<16x96xf32>
    %243 = arith.mulf %241, %242 : vector<16x96xf32>
    %244 = vector.extract_strided_slice %9 {offsets = [0, 0], sizes = [1, 96], strides = [1, 1]} : vector<4x96xf32> to vector<1x96xf32>
    %245 = vector.broadcast %244 : vector<1x96xf32> to vector<16x96xf32>
    %246 = arith.mulf %243, %245 : vector<16x96xf32>
    %247 = arith.addf %240, %246 : vector<16x96xf32>
    %248 = vector.broadcast %10 : vector<1x96xf32> to vector<16x96xf32>
    %249 = arith.addf %247, %248 : vector<16x96xf32>
    %cst_59 = arith.constant 0.000000e+00 : f32
    %250 = vector.broadcast %cst_59 : f32 to vector<16x96xf32>
    %251 = arith.subf %250, %249 : vector<16x96xf32>
    %252 = math.exp %251 : vector<16x96xf32>
    %cst_60 = arith.constant 1.000000e+00 : f32
    %253 = vector.broadcast %cst_60 : f32 to vector<16x96xf32>
    %254 = arith.addf %253, %252 : vector<16x96xf32>
    %cst_61 = arith.constant 1.000000e+00 : f32
    %255 = vector.broadcast %cst_61 : f32 to vector<16x96xf32>
    %256 = arith.divf %255, %254 : vector<16x96xf32>
    %257 = arith.mulf %249, %256 : vector<16x96xf32>
    %258 = vector.extract_strided_slice %257 {offsets = [0, 0], sizes = [16, 64], strides = [1, 1]} : vector<16x96xf32> to vector<16x64xf32>
    %259 = vector.extract_strided_slice %257 {offsets = [0, 64], sizes = [16, 16], strides = [1, 1]} : vector<16x96xf32> to vector<16x16xf32>
    %260 = vector.extract_strided_slice %257 {offsets = [0, 80], sizes = [16, 16], strides = [1, 1]} : vector<16x96xf32> to vector<16x16xf32>
    %261 = vector.broadcast %15 : vector<1x1xf32> to vector<16x1xf32>
    %262 = arith.mulf %222, %261 : vector<16x1xf32>
    %c1_i32_62 = arith.constant 1 : i32
    %263 = tpu.dynamic_rotate %262 by %c1_i32_62 dim 0 : vector<16x1xf32>, i32 -> vector<16x1xf32>
    %264 = arith.mulf %263, %63 : vector<16x1xf32>
    %265 = arith.addf %262, %264 : vector<16x1xf32>
    %c2_i32_63 = arith.constant 2 : i32
    %266 = tpu.dynamic_rotate %265 by %c2_i32_63 dim 0 : vector<16x1xf32>, i32 -> vector<16x1xf32>
    %267 = arith.mulf %266, %77 : vector<16x1xf32>
    %268 = arith.addf %265, %267 : vector<16x1xf32>
    %c4_i32_64 = arith.constant 4 : i32
    %269 = tpu.dynamic_rotate %268 by %c4_i32_64 dim 0 : vector<16x1xf32>, i32 -> vector<16x1xf32>
    %270 = arith.mulf %269, %105 : vector<16x1xf32>
    %271 = arith.addf %268, %270 : vector<16x1xf32>
    %272 = vector.shape_cast %271 : vector<16x1xf32> to vector<16x1xf32>
    %273 = vector.broadcast %272 : vector<16x1xf32> to vector<16x16xf32>
    %274 = tpu.transpose %273, [1, 0] : vector<16x16xf32> -> vector<16x16xf32>
    %275 = arith.subf %273, %274 : vector<16x16xf32>
    %cst_65 = arith.constant 0.000000e+00 : f32
    %276 = vector.broadcast %cst_65 : f32 to vector<16x16xf32>
    %277 = arith.select %45, %275, %276 : vector<16x16xi1>, vector<16x16xf32>
    %278 = math.exp %277 : vector<16x16xf32>
    %279 = arith.mulf %278, %48 : vector<16x16xf32>
    "tpu.trace_start"() <{level = 10 : i32, message = "td,sd->ts"}> : () -> ()
    %cst_66 = arith.constant dense<0.000000e+00> : vector<16x16xf32>
    %280 = tpu.matmul %260, %259, %cst_66 {dimension_numbers = #tpu.dot_dimension_numbers<[1], [1], [0], [0], [0, 0, 1, 0], [], []>} : vector<16x16xf32>, vector<16x16xf32>, vector<16x16xf32> -> vector<16x16xf32>
    "tpu.trace_stop"() : () -> ()
    %281 = arith.mulf %280, %279 : vector<16x16xf32>
    %282 = vector.broadcast %222 : vector<16x1xf32> to vector<16x64xf32>
    %283 = arith.mulf %282, %258 : vector<16x64xf32>
    %cst_67 = arith.constant dense<0.000000e+00> : vector<16x64xf32>
    %284 = tpu.matmul %281, %283, %cst_67 {dimension_numbers = #tpu.dot_dimension_numbers<[1], [0], [0], [1], [0, 0, 1, 1], [], []>} : vector<16x16xf32>, vector<16x64xf32>, vector<16x64xf32> -> vector<16x64xf32>
    %285 = vector.broadcast %16 : vector<1x1xf32> to vector<16x64xf32>
    %286 = arith.mulf %285, %258 : vector<16x64xf32>
    %287 = arith.addf %284, %286 : vector<16x64xf32>
    %cst_68 = arith.constant 0.000000e+00 : f32
    %288 = vector.broadcast %cst_68 : f32 to vector<16x64xf32>
    %289 = arith.subf %288, %211 : vector<16x64xf32>
    %290 = math.exp %289 : vector<16x64xf32>
    %cst_69 = arith.constant 1.000000e+00 : f32
    %291 = vector.broadcast %cst_69 : f32 to vector<16x64xf32>
    %292 = arith.addf %291, %290 : vector<16x64xf32>
    %cst_70 = arith.constant 1.000000e+00 : f32
    %293 = vector.broadcast %cst_70 : f32 to vector<16x64xf32>
    %294 = arith.divf %293, %292 : vector<16x64xf32>
    %295 = arith.mulf %211, %294 : vector<16x64xf32>
    %296 = arith.mulf %287, %295 : vector<16x64xf32>
    %297 = arith.mulf %296, %296 : vector<16x64xf32>
    %cst_71 = arith.constant dense<0.000000e+00> : vector<16xf32>
    %298 = vector.multi_reduction <add>, %297, %cst_71 [1] : vector<16x64xf32> to vector<16xf32>
    %299 = vector.shape_cast %298 : vector<16xf32> to vector<16x1xf32>
    %cst_72 = arith.constant 6.400000e+01 : f32
    %300 = vector.broadcast %cst_72 : f32 to vector<16x1xf32>
    %301 = arith.divf %299, %300 : vector<16x1xf32>
    %cst_73 = arith.constant 9.99999974E-6 : f32
    %302 = vector.broadcast %cst_73 : f32 to vector<16x1xf32>
    %303 = arith.addf %301, %302 : vector<16x1xf32>
    %304 = math.rsqrt %303 : vector<16x1xf32>
    %305 = vector.broadcast %304 : vector<16x1xf32> to vector<16x64xf32>
    %306 = arith.mulf %296, %305 : vector<16x64xf32>
    %307 = vector.broadcast %12 : vector<1x64xf32> to vector<16x64xf32>
    %308 = arith.mulf %306, %307 : vector<16x64xf32>
    %cst_74 = arith.constant dense<0.000000e+00> : vector<16x32xf32>
    %309 = tpu.matmul %308, %7, %cst_74 {dimension_numbers = #tpu.dot_dimension_numbers<[1], [0], [0], [1], [0, 0, 1, 1], [], []>} : vector<16x64xf32>, vector<64x32xf32>, vector<16x32xf32> -> vector<16x32xf32>
    %310 = vector.broadcast %13 : vector<1x32xf32> to vector<16x32xf32>
    %311 = arith.addf %309, %310 : vector<16x32xf32>
    %c0_75 = arith.constant 0 : index
    %c0_76 = arith.constant 0 : index
    %312 = vector.load %arg2[%c0_75, %c0_76] : memref<16x32xf32, #tpu.memory_space<vmem>>, vector<16x32xf32>
    tpu.vector_store %arg2[%c0_75, %c0_76], %311 {strides = array<i32>} : memref<16x32xf32, #tpu.memory_space<vmem>>, vector<16x32xf32>,
    return
  }
}

</mosaic_0001>

<bundles_post_ra>
// kernel: self_supervised_mamba2_forward.1
= control target key start
LH: loop header
LB: loop body
LE: loop exit
PB: predicated region body
PF: predicated region fallthrough
CT: control target
= control target key end

     0   :  { %7 = vsyncpa [#allocation3], 0  ;;  %s2557_s0 = inlined_call_operand.hbm [shape: f32[16,32], index: 0, kind: input, shape index: {}]   ;;  %s2558_s1 = inlined_call_operand.hbm [shape: f32[168,128], index: 1, kind: input, shape index: {}]   ;;  %s2559_s2 = inlined_call_operand.hbm [shape: f32[16,32], index: 2, kind: output, shape index: {}]  }
   0x1   :  { %8 = vsyncpa [#allocation6], 0 }
   0x2   :  { %9 = vsyncpa [#allocation4], 0  ;;  %s2074_s9 = smov [#allocation2]   ;;  %s2002_s13 = scalar_lea.hbm %s2557_s0, 256 }
   0x3   :  { %s15_s10 = sshll.u32 %s2074_s9, 4  ;;  %p2003_p0 = scmp.ne.s32.totalorder %s2557_s0, %s2002_s13  ;;  %s16_s10 = int_to_ptr.vmem [resolvable:$true] %s15_s10 }
   0x4   :  { %p2006_p1 = scmp.lt.u32.totalorder %s2002_s13, %s2557_s0 }
   0x6   :  { %p2008_p2 = pnand %p2006_p1, %p2003_p0 }
   0x8   :  { %2011 = shalt.err (!%p2008_p2)
}
   0x9   :  { %s2012_s18 = scalar_lea.vmem %s16_s10, 256  ;;  %p2017_p4 = scmp.lt.s32.totalorder %s16_s10, %s16_s10 }
   0xa   :  { %p2013_p3 = scmp.ne.s32.totalorder %s16_s10, %s2012_s18  ;;  %p2018_p5 = scmp.lt.s32.totalorder %s2012_s18, %s2012_s18 }
   0xc   :  { %p2019_p6 = por %p2018_p5, %p2017_p4 }
   0xe   :  { %p2020_p7 = pnand %p2019_p6, %p2013_p3 }
  0x10   :  { %2023 = shalt.err (!%p2020_p7)
}
  0x11   :  { %s2075_s19 = smov 128   ;;  %s2076_s20 = smov 8  }
  0x12   :  { %21 = dma.hbm_to_vmem [thread:$0]  %s2557_s0, 256, %s16_s10, [#allocation3], %s2075_s19, %s2075_s19, %s2076_s20  }
  0x13   :  { %s2077_s23 = smov [#allocation5]   ;;  %s2024_s27 = scalar_lea.hbm %s2558_s1, 2688 }
  0x14   :  { %s27_s24 = sshll.u32 %s2077_s23, 4  ;;  %p2025_p8 = scmp.ne.s32.totalorder %s2558_s1, %s2024_s27  ;;  %s28_s24 = int_to_ptr.vmem [resolvable:$true] %s27_s24 }
  0x15   :  { %p2028_p9 = scmp.lt.u32.totalorder %s2024_s27, %s2558_s1 }
  0x17   :  { %p2030_p10 = pnand %p2028_p9, %p2025_p8 }
  0x19   :  { %2033 = shalt.err (!%p2030_p10)
}
  0x1a   :  { %s2034_s4 = scalar_lea.vmem %s28_s24, 2688  ;;  %p2039_p12 = scmp.lt.s32.totalorder %s28_s24, %s28_s24 }
  0x1b   :  { %p2035_p11 = scmp.ne.s32.totalorder %s28_s24, %s2034_s4  ;;  %p2040_p13 = scmp.lt.s32.totalorder %s2034_s4, %s2034_s4 }
  0x1d   :  { %p2041_p0 = por %p2040_p13, %p2039_p12 }
  0x1f   :  { %p2042_p1 = pnand %p2041_p0, %p2035_p11 }
  0x21   :  { %2045 = shalt.err (!%p2042_p1)
}
  0x22   :  { %33 = dma.hbm_to_vmem [thread:$0]  %s2558_s1, 2688, %s28_s24, [#allocation6], %s2075_s19, %s2075_s19, %s2076_s20  }
  0x23   :  { %2068 = dma.done.wait [#allocation3], 256  }
  0x24   :  { %2069 = vsyncadd [#allocation3], 4294967040 }
  0x25   :  { %2070 = dma.done.wait [#allocation6], 2688  }
  0x26   :  { %2071 = vsyncadd [#allocation6], 4294964608  ;;  %v61_v0 = vlaneseq  ;;  %vm148_vm0 = vcmask 261120   ;;  %v2135_v2 = vld [vmem:[#allocation5] sm:$0xff]  ;;  %v2137_v3 = vld [vmem:[#allocation5 + $0x8] sm:$0xff]  ;;  %s2078_s1 = smov 127  }
  0x27   :  { %v2139_v4 = vld [vmem:[#allocation5 + $0x10] sm:$0xff]  ;;  %v1902_v6 = vpack.i.bf16 %v2137_v3, %v2135_v2  ;;  %v1796_v7 = vpack.c.bf16 %v2137_v3, %v2135_v2  ;;  %v2146_v8 = vld [vmem:[#allocation5 + $0x18] sm:$0xff]  ;;  %v44_v11 = vld [vmem:[#allocation5 + $0x20] sm:$0xff]  ;;  %v2079_v27 = vmov 0.0   ;;  %s2080_s6 = smov 32   ;;  %s2081_s7 = smov 96  }
  0x28   :  { %v2133_v1 = vshrl.u32 %v61_v0, 7  ;;  %v146_v9 = vld [vmem:[#allocation2] sm:$0xff]  ;;  %v1800_v10 = vpack.c.bf16 %v2146_v8, %v2139_v4  ;;  %v45_v12 = vld [vmem:[#allocation5 + $0x28] sm:$0xff]  ;;  %v2151_v13 = vld [vmem:[#allocation5 + $0xa0] sm:$0xff]  ;;  %s2082_s8 = smov 64   ;;  %s2083_s9 = smov 48   ;;  %v1907_v2 = vpack.i.bf16 %v2146_v8, %v2139_v4 }
  0x29   :  { %1694 = vmatprep.mubr.msk.f32.mxu1 %vm148_vm0, %v146_v9  ;;  %1797 = vmatprep.subr.bf16.mxu1 %v1796_v7  ;;  %v1804_v15 = vpack.c.bf16 %v45_v12, %v44_v11  ;;  %v46_v16 = vld [vmem:[#allocation5 + $0x30] sm:$0xff]  ;;  %v47_v17 = vld [vmem:[#allocation5 + $0x38] sm:$0xff]  ;;  %vm549_vm14 = vcmask 130048   ;;  %s2085_s10 = smov 30   ;;  %s2086_s12 = smov [#allocation7]  }
  0x2a   :  { %v307_v5 = vsub.s32 5, %v2133_v1  ;;  %1799 = vmatpush3.bf16.msra.mxu1 %v1796_v7  ;;  %v147_v18 = vld [vmem:[#allocation2 + $0x8] sm:$0xff]  ;;  %v1808_v19 = vpack.c.bf16 %v47_v17, %v46_v16  ;;  %v2163_v21 = vadd.s32 8, %v2133_v1  ;;  %v339_v23 = vsub.s32 3, %v2133_v1  ;;  %vm2299_vm15 = vmpackc.low %vm549_vm14, %vm549_vm14  ;;  %s1589_s13 = sshll.u32 %s2086_s12, 4  ;;  %s1590_s13 = int_to_ptr.vmem [resolvable:$true] %s1589_s13 }
  0x2b   :  { %1801 = vmatprep.subr.bf16.mxu1 %v1800_v10  ;;  %vm122_vm1 = vcmp.ge.s32.totalorder %v2133_v1, 3  ;;  %v382_v24 = vsub.s32 0, %v2133_v1  ;;  %vm98_vm3 = vcmp.ge.s32.totalorder %v2133_v1, 1  ;;  %v352_v25 = vsub.s32 2, %v2133_v1  ;;  %s2046_s14 = scalar_lea.vmem %s1590_s13, 256  ;;  %p2051_p3 = scmp.lt.s32.totalorder %s1590_s13, %s1590_s13 }
  0x2c   :  { %v2154_v14 = vrot.slane %v2151_v13, %v307_v5  ;;  %vm127_vm2 = vcmp.ge.s32.totalorder %v2163_v21, 11  ;;  %vm103_vm4 = vcmp.ge.s32.totalorder %v2163_v21, 9  ;;  %v2175_v26 = vrot.slane %v2151_v13, %v339_v23  ;;  %p2047_p2 = scmp.ne.s32.totalorder %s1590_s13, %s2046_s14  ;;  %p2052_p4 = scmp.lt.s32.totalorder %s2046_s14, %s2046_s14 }
  0x2d   :  { %v2178_v28 = vsel %vm122_vm1, 1.0, %v2079_v27  ;;  %v2181_v29 = vsel %vm127_vm2, 1.0, %v2079_v27  ;;  %vm375_vm5 = vcmp.lt.s32.totalorder %v2133_v1, 3  ;;  %v2185_v31 = vrot.slane %v2151_v13, %v382_v24 }
  0x2e   :  { %409 = vrot.lane.b32.xlu0 %v2154_v14, %s2078_s1  ;;  %1803 = vmatpush3.bf16.msra.mxu1 %v1800_v10  ;;  %v2188_v32 = vsel %vm98_vm3, 1.0, %v2079_v27  ;;  %vm345_vm6 = vcmp.lt.s32.totalorder %v2133_v1, 1  ;;  %v2192_v33 = vsel %vm103_vm4, 1.0, %v2079_v27  ;;  %v2195_v37 = vrot.slane %v2151_v13, %v352_v25  ;;  %p2053_p5 = por %p2052_p4, %p2051_p3 }
  0x2f   :  { %1805 = vmatprep.subr.bf16.mxu1 %v1804_v15  ;;  %vm110_vm7 = vcmp.ge.s32.totalorder %v2133_v1, 2  ;;  %v367_v40 = vsub.s32 1, %v2133_v1  ;;  %vm115_vm8 = vcmp.ge.s32.totalorder %v2163_v21, 10  ;;  %vm360_vm9 = vcmp.lt.s32.totalorder %v2133_v1, 2 }
  0x30   :  { %v2217_v51 = vsel %vm110_vm7, 1.0, %v2079_v27  ;;  %v2226_v54 = vsel %vm115_vm8, 1.0, %v2079_v27  ;;  %vm134_vm1 = vcmp.ge.s32.totalorder %v2133_v1, 4  ;;  %vm139_vm2 = vcmp.ge.s32.totalorder %v2163_v21, 12  ;;  %p2054_p6 = pnand %p2053_p5, %p2047_p2 }
  0x31   :  { %1695 = vmatmul.mubr.msk.f32.vlgmr.msra.gmra.mrb[0].mxu1 %vm148_vm0, %v147_v18  ;;  %v2221_v53 = vrot.slane %v2151_v13, %v367_v40  ;;  %vm472_vm3 = vcmp.lt.s32.totalorder %v2133_v1, 4 }
  0x32   :  { %1807 = vmatpush3.bf16.msra.mxu1 %v1804_v15  ;;  %1705 = vmatprep.mubr.msk.f32.mxu1 %vm148_vm0, %v146_v9 }
  0x33   :  { %1809 = vmatprep.subr.bf16.mxu1 %v1808_v19 }
  0x36   :  { %1811 = vmatpush3.bf16.msra.mxu1 %v1808_v19 }
  0x39   :  { %1706 = vmatmul.mubr.msk.f32.vlgmr.msra.gmra.mrb[2].mxu1 %vm148_vm0, %v147_v18 }
 0x104   :  { %v2160_v20 = vpop.f32.mrb[0].mxu1 }
 0x105   :  { %v2165_v22 = vpop.f32.mrb[1].mxu1 }
 0x10c   :  { %v1707_v30 = vpop.f32.mrb[2].mxu1 }
 0x10d   :  { %v344_v34 = vrot.slane %v1707_v30, 7  ;;  %v374_v35 = vrot.slane %v1707_v30, 5  ;;  %v296_v36 = vpop.f32.mrb[3].mxu1  ;;  %v359_v41 = vrot.slane %v1707_v30, 6  ;;  %v310_v44 = vadd.f32 %v1707_v30, %v2154_v14 }
 0x10e   :  { %v2199_v38 = vadd.f32 %v2154_v14, %v296_v36  ;;  %v343_v39 = vrot.slane %v296_v36, 7  ;;  %v358_v42 = vrot.slane %v296_v36, 6  ;;  %v373_v43 = vrot.slane %v296_v36, 5 }
 0x10f   :  { %v315_v50 = vmul.f32 1.442695, %v310_v44  ;;  %v342_v58 = vmul.f32 %v1707_v30, %v2175_v26  ;;  %v341_v59 = vmul.f32 %v2175_v26, %v296_v36  ;;  %vm312_vm13 = vcmp.gt.f32.partialorder %v310_v44, 20.0 }
 0x110   :  { %v313_v45 = vmul.f32 1.442695, %v2199_v38  ;;  %v347_v46 = vsel %vm345_vm6, %v344_v34, %v343_v39  ;;  %v346_v47 = vsel %vm345_vm6, %v343_v39, %v344_v34  ;;  %v376_v48 = vsel %vm375_vm5, %v373_v43, %v374_v35 }
 0x111   :  { %v377_v49 = vsel %vm375_vm5, %v374_v35, %v373_v43  ;;  %v348_v52 = vmul.f32 %v347_v46, %v2188_v32  ;;  %v349_v55 = vmul.f32 %v346_v47, %v2192_v33  ;;  %v362_v56 = vsel %vm360_vm9, %v359_v41, %v358_v42 }
 0x112   :  { %1937 = vpow2.f32 %v313_v45  ;;  %v361_v57 = vsel %vm360_vm9, %v358_v42, %v359_v41  ;;  %v378_v60 = vmul.f32 %v377_v49, %v2178_v28  ;;  %v379_v62 = vmul.f32 %v376_v48, %v2181_v29  ;;  %v2245_v48 = vpop.permute.xlu0 %409 }
 0x113   :  { %1939 = vpow2.f32 %v315_v50  ;;  %v354_v61 = vmul.f32 %v2195_v37, %v348_v52  ;;  %v355_v63 = vmul.f32 %v2195_v37, %v349_v55  ;;  %v363_v5 = vmul.f32 %v362_v56, %v2217_v51 }
 0x114   :  { %v364_v7 = vmul.f32 %v361_v57, %v2226_v54  ;;  %v384_v15 = vmul.f32 %v2185_v31, %v378_v60  ;;  %v385_v16 = vmul.f32 %v2185_v31, %v379_v62  ;;  %vm311_vm12 = vcmp.gt.f32.partialorder %v2199_v38, 20.0 }
 0x115   :  { %v356_v9 = vadd.f32 %v354_v61, %v341_v59  ;;  %v357_v10 = vadd.f32 %v355_v63, %v342_v58  ;;  %v369_v11 = vmul.f32 %v2221_v53, %v363_v5 }
 0x116   :  { %v370_v12 = vmul.f32 %v2221_v53, %v364_v7 }
 0x117   :  { %v371_v17 = vadd.f32 %v369_v11, %v356_v9 }
 0x118   :  { %v372_v18 = vadd.f32 %v370_v12, %v357_v10 }
 0x119   :  { %v386_v19 = vadd.f32 %v384_v15, %v371_v17  ;;  %v390_v15 = vsub.s32 4, %v2133_v1 }
 0x11a   :  { %v387_v23 = vadd.f32 %v385_v16, %v372_v18 }
 0x11b   :  { %v2271_v16 = vrot.slane %v2151_v13, %v390_v15 }
 0x11c   :  { %v1938_v24 = vpop.eup %1937 }
 0x11d   :  { %v1940_v25 = vpop.eup %1939  ;;  %v317_v30 = vadd.f32 1.0, %v1938_v24  ;;  %v320_v35 = vmul.f32 -0.5, %v1938_v24  ;;  %v323_v41 = vand.u32 2147483647, %v1938_v24  ;;  %v392_v17 = vadd.f32 %v2271_v16, %v386_v19 }
 0x11e   :  { %v326_v34 = vadd.f32 1.0, %v1940_v25  ;;  %v329_v36 = vmul.f32 -0.5, %v1940_v25  ;;  %v332_v42 = vand.u32 2147483647, %v1940_v25  ;;  %v393_v18 = vadd.f32 %v2271_v16, %v387_v23 }
 0x11f   :  { %1941 = vlog2.f32 %v317_v30  ;;  %v321_v39 = vadd.f32 1.0, %v320_v35  ;;  %vm324_vm10 = vcmp.lt.f32.partialorder %v323_v41, 0.0004427343 }
 0x120   :  { %1943 = vlog2.f32 %v326_v34  ;;  %v330_v40 = vadd.f32 1.0, %v329_v36  ;;  %vm333_vm11 = vcmp.lt.f32.partialorder %v332_v42, 0.0004427343 }
 0x121   :  { %v322_v47 = vmul.f32 %v1938_v24, %v321_v39  ;;  %v394_v24 = vsub.f32 0.0, %v392_v17 }
 0x122   :  { %v331_v50 = vmul.f32 %v1940_v25, %v330_v40  ;;  %v395_v25 = vsub.f32 0.0, %v393_v18 }
 0x123   :  { %v396_v30 = vmul.f32 1.442695, %v394_v24  ;;  %v2312_v24 = vsel %vm134_vm1, 1.0, %v2079_v27 }
 0x124   :  { %v398_v34 = vmul.f32 1.442695, %v395_v25  ;;  %v2315_v25 = vsel %vm139_vm2, 1.0, %v2079_v27  ;;  %vm755_vm2 = vcmask 523264  }
 0x125   :  { %1945 = vpow2.f32 %v396_v30 }
 0x126   :  { %1947 = vpow2.f32 %v398_v34 }
 0x129   :  { %v1942_v43 = vpop.eup %1941 }
 0x12a   :  { %v1944_v45 = vpop.eup %1943  ;;  %v319_v46 = vmul.f32 0.6931472, %v1942_v43 }
 0x12b   :  { %v328_v49 = vmul.f32 0.6931472, %v1944_v45 }
 0x12c   :  { %v325_v52 = vsel %vm324_vm10, %v322_v47, %v319_v46 }
 0x12d   :  { %v334_v55 = vsel %vm333_vm11, %v331_v50, %v328_v49  ;;  %v2249_v56 = vsel %vm311_vm12, %v2199_v38, %v325_v52 }
 0x12e   :  { %v2251_v57 = vsel %vm312_vm13, %v310_v44, %v334_v55  ;;  %v412_v58 = vmul.f32 %v2245_v48, %v2249_v56 }
 0x12f   :  { %v413_v59 = vmul.f32 %v2245_v48, %v2251_v57  ;;  %v1946_v35 = vpop.eup %1945 }
 0x130   :  { %416 = vrot.lane.b32.xlu0 %v412_v58, %s2080_s6  ;;  %v1948_v36 = vpop.eup %1947  ;;  %v400_v39 = vadd.f32 1.0, %v1946_v35 }
 0x131   :  { %418 = vrot.lane.b32.xlu1 %v413_v59, %s2080_s6  ;;  %v401_v40 = vadd.f32 1.0, %v1948_v36 }
 0x132   :  { %1949 = vrcp.f32 %v400_v39 }
 0x133   :  { %1951 = vrcp.f32 %v401_v40 }
 0x13c   :  { %v1950_v41 = vpop.eup %1949 }
 0x13d   :  { %v1952_v45 = vpop.eup %1951  ;;  %v2281_v52 = vmul.f32 %v1950_v41, %v392_v17 }
 0x13e   :  { %v2283_v55 = vmul.f32 %v1952_v45, %v393_v18 }
 0x1a2   :  { %v417_v60 = vpop.permute.xlu0 %416 }
 0x1a3   :  { %v419_v61 = vpop.permute.xlu1 %418  ;;  %v422_v62 = vrot.slane %v417_v60, 7 }
 0x1a4   :  { %v423_v63 = vrot.slane %v419_v61, 7 }
 0x1a6   :  { %v425_v38 = vsel %vm345_vm6, %v423_v63, %v422_v62  ;;  %v424_v44 = vsel %vm345_vm6, %v422_v62, %v423_v63 }
 0x1a7   :  { %v426_v5 = vmul.f32 %v425_v38, %v2188_v32  ;;  %v427_v7 = vmul.f32 %v424_v44, %v2192_v33 }
 0x1a9   :  { %430 = vrot.lane.b32.xlu1 %v426_v5, %s2081_s7  ;;  %432 = vrot.lane.b32.xlu0 %v427_v7, %s2081_s7 }
 0x21b   :  { %v431_v9 = vpop.permute.xlu1 %430  ;;  %v433_v10 = vpop.permute.xlu0 %432 }
 0x21c   :  { %v436_v11 = vadd.f32 %v431_v9, %v412_v58  ;;  %v437_v12 = vadd.f32 %v433_v10, %v413_v59  ;;  %v1895_v58 = vpack.i.bf16 %v2283_v55, %v2281_v52 }
 0x21e   :  { %440 = vrot.lane.b32.xlu1 %v436_v11, %s2080_s6  ;;  %442 = vrot.lane.b32.xlu0 %v437_v12, %s2080_s6 }
 0x290   :  { %v441_v42 = vpop.permute.xlu1 %440  ;;  %v443_v43 = vpop.permute.xlu0 %442 }
 0x291   :  { %v446_v46 = vrot.slane %v441_v42, 6  ;;  %v447_v19 = vrot.slane %v443_v43, 6 }
 0x293   :  { %v449_v23 = vsel %vm360_vm9, %v447_v19, %v446_v46  ;;  %v448_v47 = vsel %vm360_vm9, %v446_v46, %v447_v19  ;;  %v648_v46 = vrot.slane %v2151_v13, 5 }
 0x294   :  { %v450_v49 = vmul.f32 %v449_v23, %v2217_v51  ;;  %v451_v50 = vmul.f32 %v448_v47, %v2226_v54 }
 0x296   :  { %454 = vrot.lane.b32.xlu1 %v450_v49, %s2081_s7  ;;  %456 = vrot.lane.b32.xlu0 %v451_v50, %s2081_s7 }
 0x29a   :  { %1896 = vrot.lane.b32.xlu1 %v1895_v58, %s2082_s8  ;;  %541 = vrot.lane.b32.xlu0 %v2281_v52, %s2083_s9 }
 0x29e   :  { %543 = vrot.lane.b32.xlu1 %v2283_v55, %s2083_s9 }
 0x308   :  { %v455_v59 = vpop.permute.xlu1 %454  ;;  %v457_v60 = vpop.permute.xlu0 %456 }
 0x309   :  { %v460_v61 = vadd.f32 %v455_v59, %v436_v11  ;;  %v461_v62 = vadd.f32 %v457_v60, %v437_v12  ;;  %v2084_v11 = vmov 96  }
 0x30a   :  { %1901 = vset.pattern.permute.xlu1 %v2084_v11  ;;  %1900 = vset.pattern.permute.xlu0 %v2084_v11 }
 0x30b   :  { %464 = vrot.lane.b32.xlu0 %v460_v61, %s2080_s6  ;;  %466 = vrot.lane.b32.xlu1 %v461_v62, %s2080_s6 }
 0x30c   :  { %v1897_v63 = vpop.permute.xlu1 %1896  ;;  %v542_v38 = vpop.permute.xlu0 %541 }
 0x30d   :  { %v1899_v44 = vunpack.i.h.bf16 %v1897_v63  ;;  %v1898_v5 = vunpack.i.l.bf16 %v1897_v63  ;;  %1712 = vmatprep.mubr.msk.f32.mxu0 %vm549_vm14, %v542_v38 }
 0x30f   :  { %v1812_v9 = vpack.c.bf16 %v1899_v44, %v1898_v5 }
 0x310   :  { %v544_v10 = vpop.permute.xlu1 %543 }
 0x311   :  { %1814 = vmatprep.subr.msk.bf16.mxu0 %vm2299_vm15, %v1812_v9 }
 0x312   :  { %1817 = vmatpush3.bf16.xpose.msk.msra.mxu0 %vm2299_vm15, %v1812_v9 }
 0x319   :  { %1713 = vmatmul.mubr.msk.f32.vlgmr.msra.gmra.mrb[0].mxu0 %vm549_vm14, %v544_v10 }
 0x37d   :  { %v467_v12 = vpop.permute.xlu1 %466  ;;  %v465_v15 = vpop.permute.xlu0 %464 }
 0x37e   :  { %v471_v17 = vrot.slane %v467_v12, 4  ;;  %v470_v18 = vrot.slane %v465_v15, 4 }
 0x380   :  { %v474_v30 = vsel %vm472_vm3, %v471_v17, %v470_v18  ;;  %v473_v34 = vsel %vm472_vm3, %v470_v18, %v471_v17 }
 0x381   :  { %v475_v35 = vmul.f32 %v474_v30, %v2312_v24  ;;  %v476_v36 = vmul.f32 %v473_v34, %v2315_v25 }
 0x383   :  { %479 = vrot.lane.b32.xlu0 %v475_v35, %s2081_s7  ;;  %481 = vrot.lane.b32.xlu1 %v476_v36, %s2081_s7  ;;  %v738_v35 = vsub.f32 0.0, %v2160_v20  ;;  %v737_v36 = vsub.f32 0.0, %v2165_v22 }
 0x3ec   :  { %v1714_v39 = vpop.f32.mrb[0].mxu0 }
 0x3ed   :  { %v624_v40 = vpop.f32.mrb[1].mxu0 }
 0x3f5   :  { %v480_v41 = vpop.permute.xlu0 %479  ;;  %v482_v42 = vpop.permute.xlu1 %481 }
 0x3f6   :  { %v485_v43 = vadd.f32 %v480_v41, %v460_v61  ;;  %v486_v45 = vadd.f32 %v482_v42, %v461_v62  ;;  %v741_v41 = vmul.f32 1.442695, %v738_v35  ;;  %v739_v42 = vmul.f32 1.442695, %v737_v36 }
 0x3f8   :  { %489 = vperm.xlu0 %1900, %v485_v43   ;;  %494 = vperm.xlu1 %1901, %v486_v45  }
 0x3fc   :  { %642 = vperm.xlu0 %1900, %v2251_v57   ;;  %637 = vperm.xlu1 %1901, %v2249_v56   ;;  %v65_v56 = vand.u32 127, %v61_v0 }
 0x3fe   :  { %vm75_vm4 = vcmp.lt.s32.totalorder %v65_v56, 8  ;;  %vm92_vm7 = vcmp.le.s32.totalorder %v65_v56, %v2133_v1  ;;  %vm84_vm8 = vcmp.ge.s32.totalorder %v65_v56, 8  ;;  %vm87_vm10 = vcmp.lt.s32.totalorder %v65_v56, 16 }
 0x3ff   :  { %vm2332_vm11 = vmand %vm75_vm4, %vm92_vm7  ;;  %vm93_vm13 = vcmp.le.s32.totalorder %v65_v56, %v2163_v21 }
 0x400   :  { %649 = vrot.lane.b32.xlu0 %v648_v46, %s2085_s10  ;;  %vm89_vm12 = vmand %vm84_vm8, %vm87_vm10  ;;  %v2348_v21 = vsel %vm2332_vm11, 1.0, %v2079_v27 }
 0x401   :  { %vm2339_vm1 = vmand %vm89_vm12, %vm93_vm13 }
 0x402   :  { %v2354_v15 = vsel %vm2339_vm1, 1.0, %v2079_v27 }
 0x477   :  { %v490_v19 = vpop.permute.xlu0 %489  ;;  %v495_v23 = vpop.permute.xlu1 %494 }
 0x478   :  { %497 = vxpose.xlu1.b32.start [1/2] (short) (narrow) %v490_v19, 16 }
 0x47b   :  { %v643_v47 = vpop.permute.xlu0 %642  ;;  %v638_v49 = vpop.permute.xlu1 %637 }
 0x47c   :  { %v646_v50 = vmul.f32 %v643_v47, %v2283_v55  ;;  %v645_v58 = vmul.f32 %v638_v49, %v2281_v52  ;;  %498 = vxpose.xlu1.b32.end [2/2] (short) (narrow) %v495_v23, 16 }
 0x47e   :  { %v1818_v59 = vpack.c.bf16 %v646_v50, %v645_v58 }
 0x47f   :  { %v650_v60 = vpop.permute.xlu0 %649 }
 0x480   :  { %1880 = vpush %v650_v60  ;;  %1819 = vmatprep.subr.bf16.mxu1 %v1818_v59 }
 0x481   :  { %1821 = vmatpush3.bf16.msra.mxu1 %v1818_v59 }
 0x49a   :  { %1908 = vrot.lane.b32.xlu1 %v1907_v2, %s2082_s8 }
 0x4b1   :  { %s1881_s11 = spop %1880 }
 0x4b2   :  { %v2361_v46 = vstv %s1881_s11 }
 0x4b3   :  { %v654_v49 = vmul.f32 %v2361_v46, %v2281_v52  ;;  %v2373_v52 = vld [vmem:[#allocation5 + $0x68] sm:$0xff] }
 0x4f8   :  { %v513_v61 = vpop.trf.xlu1 }
 0x4f9   :  { %v529_v62 = vsub.f32 %v490_v19, %v513_v61 }
 0x4fb   :  { %v531_v63 = vsel %vm2332_vm11, %v529_v62, 0.0 }
 0x4fc   :  { %v533_v38 = vmul.f32 1.442695, %v531_v63  ;;  %v514_v44 = vpop.trf.xlu1 }
 0x4fd   :  { %v530_v5 = vsub.f32 %v495_v23, %v514_v44  ;;  %v655_v23 = vmul.f32 %v2361_v46, %v2283_v55 }
 0x4fe   :  { %1953 = vpow2.f32 %v533_v38 }
 0x4ff   :  { %v532_v9 = vsel %vm2339_vm1, %v530_v5, 0.0  ;;  %v2371_v5 = vld [vmem:[#allocation5 + $0x60] sm:$0xff] }
 0x500   :  { %v535_v10 = vmul.f32 1.442695, %v532_v9  ;;  %v2379_v9 = vld [vmem:[#allocation5 + $0x78] sm:$0xff] }
 0x502   :  { %1955 = vpow2.f32 %v535_v10 }
 0x503   :  { %1957 = vpow2.f32 %v741_v41 }
 0x504   :  { %1959 = vpow2.f32 %v739_v42 }
 0x508   :  { %v1954_v11 = vpop.eup %1953 }
 0x509   :  { %v537_v12 = vmul.f32 %v1954_v11, %v2348_v21  ;;  %v2387_v11 = vld [vmem:[#allocation5 + $0x80] sm:$0xff] }
 0x50b   :  { %v633_v17 = vmul.f32 %v624_v40, %v537_v12  ;;  %v2389_v12 = vld [vmem:[#allocation5 + $0x88] sm:$0xff] }
 0x50c   :  { %v1956_v18 = vpop.eup %1955 }
 0x50d   :  { %v538_v30 = vmul.f32 %v1956_v18, %v2354_v15  ;;  %1719 = vmatprep.mubr.msk.f32.mxu1 %vm549_vm14, %v633_v17  ;;  %v1958_v43 = vpop.eup %1957  ;;  %v1830_v17 = vpack.c.bf16 %v2389_v12, %v2387_v11  ;;  %v2393_v18 = vld [vmem:[#allocation5 + $0x90] sm:$0xff] }
 0x50e   :  { %v1960_v27 = vpop.eup %1959  ;;  %v744_v45 = vadd.f32 1.0, %v1958_v43 }
 0x50f   :  { %v634_v34 = vmul.f32 %v1714_v39, %v538_v30  ;;  %v743_v40 = vadd.f32 1.0, %v1960_v27  ;;  %v2395_v30 = vld [vmem:[#allocation5 + $0x98] sm:$0xff] }
 0x510   :  { %1961 = vrcp.f32 %v744_v45 }
 0x511   :  { %1720 = vmatmul.mubr.msk.f32.vlgmr.msra.gmra.mrb[4].mxu1 %vm549_vm14, %v634_v34  ;;  %1963 = vrcp.f32 %v743_v40  ;;  %v1834_v34 = vpack.c.bf16 %v2395_v30, %v2393_v18 }
 0x51a   :  { %v1962_v39 = vpop.eup %1961 }
 0x51b   :  { %v1964_v19 = vpop.eup %1963  ;;  %v750_v50 = vmul.f32 %v1962_v39, %v2160_v20  ;;  %v1822_v20 = vpack.c.bf16 %v2373_v52, %v2371_v5  ;;  %v1909_v39 = vpop.permute.xlu1 %1908 }
 0x51c   :  { %v749_v60 = vmul.f32 %v1964_v19, %v2165_v22  ;;  %v2377_v22 = vld [vmem:[#allocation5 + $0x70] sm:$0xff]  ;;  %v1911_v19 = vunpack.i.h.bf16 %v1909_v39 }
 0x51d   :  { %1823 = vmatprep.subr.bf16.mxu1 %v1822_v20  ;;  %v1826_v10 = vpack.c.bf16 %v2379_v9, %v2377_v22 }
 0x51e   :  { %1825 = vmatpush3.bf16.msra.mxu1 %v1822_v20  ;;  %v51_v20 = vld [vmem:[#allocation5 + $0x58] sm:$0xff] }
 0x51f   :  { %1827 = vmatprep.subr.bf16.mxu1 %v1826_v10 }
 0x522   :  { %1829 = vmatpush3.bf16.msra.mxu1 %v1826_v10 }
 0x523   :  { %1831 = vmatprep.subr.bf16.mxu1 %v1830_v17 }
 0x526   :  { %1833 = vmatpush3.bf16.msra.mxu1 %v1830_v17 }
 0x527   :  { %1835 = vmatprep.subr.bf16.mxu1 %v1834_v34 }
 0x52a   :  { %1837 = vmatpush3.bf16.msra.mxu1 %v1834_v34 }
 0x5e4   :  { %v1721_v47 = vpop.f32.mrb[4].mxu1 }
 0x5e5   :  { %v734_v58 = vadd.f32 %v1721_v47, %v655_v23  ;;  %v728_v59 = vpop.f32.mrb[5].mxu1  ;;  %v1910_v23 = vunpack.i.l.bf16 %v1909_v39 }
 0x5e6   :  { %v729_v56 = vadd.f32 %v728_v59, %v654_v49 }
 0x5e7   :  { %v752_v61 = vmul.f32 %v750_v50, %v734_v58  ;;  %v1842_v8 = vpack.c.bf16 %v1911_v19, %v1910_v23 }
 0x5e8   :  { %v751_v62 = vmul.f32 %v749_v60, %v729_v56  ;;  %v48_v60 = vld [vmem:[#allocation5 + $0x40] sm:$0xff]  ;;  %v49_v56 = vld [vmem:[#allocation5 + $0x48] sm:$0xff] }
 0x5e9   :  { %v754_v44 = vmul.f32 %v752_v61, %v752_v61 }
 0x5ea   :  { %v753_v63 = vmul.f32 %v751_v62, %v751_v62 }
 0x5eb   :  { %v759_v55 = vsel %vm755_vm2, %v754_v44, 0.0 }
 0x5ec   :  { %v756_v38 = vsel %vm755_vm2, %v753_v63, 0.0  ;;  %v1846_v63 = vpack.c.bf16 %v49_v56, %v48_v60 }
 0x5ed   :  { %757 = vadd.xlane.f32.xlu0 %v756_v38 }
 0x5f1   :  { %760 = vadd.xlane.f32.xlu0 %v759_v55 }
 0x607   :  { %1903 = vrot.lane.b32.xlu0 %v1902_v6, %s2082_s8 }
 0x67a   :  { %v758_v3 = vpop.xlane.xlu0 %757 }
 0x67b   :  { %v763_v6 = vmul.f32 0.015625, %v758_v3 }
 0x67d   :  { %v765_v35 = vadd.f32 1e-05, %v763_v6  ;;  %v963_v6 = vsub.s32 7, %v2133_v1 }
 0x67e   :  { %v761_v36 = vpop.xlane.xlu0 %760 }
 0x67f   :  { %1965 = vrsqrt.f32 %v765_v35  ;;  %v764_v41 = vmul.f32 0.015625, %v761_v36  ;;  %v964_v35 = vrot.slane %v2151_v13, %v963_v6 }
 0x681   :  { %v766_v42 = vadd.f32 1e-05, %v764_v41 }
 0x682   :  { %v1904_v43 = vpop.permute.xlu0 %1903 }
 0x683   :  { %1967 = vrsqrt.f32 %v766_v42  ;;  %v1906_v27 = vunpack.i.h.bf16 %v1904_v43  ;;  %v1905_v45 = vunpack.i.l.bf16 %v1904_v43 }
 0x685   :  { %v1838_v40 = vpack.c.bf16 %v1906_v27, %v1905_v45 }
 0x687   :  { %1839 = vmatprep.subr.bf16.mxu0 %v1838_v40 }
 0x688   :  { %1841 = vmatpush3.bf16.msra.mxu0 %v1838_v40 }
 0x689   :  { %v1966_v4 = vpop.eup %1965  ;;  %1843 = vmatprep.subr.bf16.mxu0 %v1842_v8 }
 0x68a   :  { %v769_v47 = vmul.f32 %v1966_v4, %v751_v62  ;;  %v50_v62 = vld [vmem:[#allocation5 + $0x50] sm:$0xff] }
 0x68c   :  { %v771_v49 = vmul.f32 %v769_v47, %v2154_v14  ;;  %1845 = vmatpush3.bf16.msra.mxu0 %v1842_v8 }
 0x68d   :  { %v1968_v50 = vpop.eup %1967  ;;  %1847 = vmatprep.subr.bf16.mxu0 %v1846_v63 }
 0x68e   :  { %v770_v58 = vmul.f32 %v1968_v50, %v752_v61  ;;  %1738 = vmatprep.mubr.msk.f32.mxu1 %vm755_vm2, %v771_v49  ;;  %v1850_v61 = vpack.c.bf16 %v51_v20, %v50_v62 }
 0x690   :  { %v772_v59 = vmul.f32 %v770_v58, %v2154_v14 }
 0x692   :  { %1739 = vmatmul.mubr.msk.f32.vlgmr.msra.gmra.mrb[6].mxu1 %vm755_vm2, %v772_v59 }
 0x765   :  { %v1740_v38 = vpop.f32.mrb[6].mxu1 }
 0x766   :  { %v857_v44 = vmul.f32 0.01, %v1740_v38  ;;  %v845_v55 = vpop.f32.mrb[7].mxu1  ;;  %vm855_vm4 = vcmp.ge.f32.partialorder %v1740_v38, 0.0 }
 0x767   :  { %vm854_vm7 = vcmp.ge.f32.partialorder %v845_v55, 0.0  ;;  %v856_v10 = vmul.f32 0.01, %v845_v55 }
 0x768   :  { %v859_v34 = vsel %vm855_vm4, %v1740_v38, %v857_v44 }
 0x769   :  { %v858_v17 = vsel %vm854_vm7, %v845_v55, %v856_v10 }
 0x76a   :  { %1749 = vmatprep.mubr.msk.f32.mxu0 %vm148_vm0, %v858_v17 }
 0x76b   :  { %1750 = vmatmul.mubr.msk.f32.vlgmr.msra.gmra.mrb[2].mxu0 %vm148_vm0, %v859_v34 }
 0x76c   :  { %1849 = vmatpush3.bf16.msra.mxu0 %v1846_v63  ;;  %1760 = vmatprep.mubr.msk.f32.mxu0 %vm148_vm0, %v858_v17 }
 0x76d   :  { %1851 = vmatprep.subr.bf16.mxu0 %v1850_v61 }
 0x770   :  { %1853 = vmatpush3.bf16.msra.mxu0 %v1850_v61 }
 0x773   :  { %1761 = vmatmul.mubr.msk.f32.vlgmr.msra.gmra.mrb[4].mxu0 %vm148_vm0, %v859_v34 }
 0x83e   :  { %v2410_v2 = vpop.f32.mrb[2].mxu0 }
 0x83f   :  { %v2412_v3 = vpop.f32.mrb[3].mxu0 }
 0x846   :  { %v1762_v36 = vpop.f32.mrb[4].mxu0 }
 0x847   :  { %v1037_v41 = vadd.f32 %v1762_v36, %v964_v35  ;;  %v1031_v42 = vpop.f32.mrb[5].mxu0 }
 0x848   :  { %v1032_v43 = vadd.f32 %v1031_v42, %v964_v35 }
 0x849   :  { %v1071_v27 = vrot.slane %v1037_v41, 7  ;;  %v1081_v45 = vrot.slane %v1037_v41, 6  ;;  %v1091_v40 = vrot.slane %v1037_v41, 5  ;;  %v1069_v4 = vmul.f32 %v1037_v41, %v2175_v26 }
 0x84a   :  { %v1070_v39 = vrot.slane %v1032_v43, 7  ;;  %v1080_v19 = vrot.slane %v1032_v43, 6  ;;  %v1090_v23 = vrot.slane %v1032_v43, 5  ;;  %v1040_v8 = vadd.f32 %v1032_v43, %v2154_v14 }
 0x84b   :  { %v1041_v56 = vadd.f32 %v1037_v41, %v2154_v14  ;;  %v1068_v62 = vmul.f32 %v1032_v43, %v2175_v26 }
 0x84c   :  { %v1072_v47 = vsel %vm345_vm6, %v1070_v39, %v1071_v27  ;;  %v1073_v13 = vsel %vm345_vm6, %v1071_v27, %v1070_v39  ;;  %v1082_v49 = vsel %vm360_vm9, %v1080_v19, %v1081_v45  ;;  %v1083_v50 = vsel %vm360_vm9, %v1081_v45, %v1080_v19 }
 0x84d   :  { %v1074_v58 = vmul.f32 %v1073_v13, %v2188_v32  ;;  %v1075_v59 = vmul.f32 %v1072_v47, %v2192_v33  ;;  %v1084_v60 = vmul.f32 %v1083_v50, %v2217_v51  ;;  %v1085_v63 = vmul.f32 %v1082_v49, %v2226_v54 }
 0x84e   :  { %v1092_v38 = vsel %vm375_vm5, %v1090_v23, %v1091_v40  ;;  %v1093_v44 = vsel %vm375_vm5, %v1091_v40, %v1090_v23  ;;  %v1044_v55 = vmul.f32 1.442695, %v1040_v8  ;;  %v1046_v35 = vmul.f32 1.442695, %v1041_v56 }
 0x84f   :  { %v1076_v20 = vmul.f32 %v1074_v58, %v2195_v37  ;;  %v1077_v10 = vmul.f32 %v1075_v59, %v2195_v37  ;;  %v1094_v17 = vmul.f32 %v1093_v44, %v2178_v28  ;;  %v1095_v61 = vmul.f32 %v1092_v38, %v2181_v29 }
 0x850   :  { %1969 = vpow2.f32 %v1044_v55  ;;  %v1086_v6 = vmul.f32 %v1084_v60, %v2221_v53  ;;  %v1087_v41 = vmul.f32 %v1085_v63, %v2221_v53  ;;  %vm1042_vm8 = vcmp.gt.f32.partialorder %v1040_v8, 20.0 }
 0x851   :  { %v1078_v34 = vadd.f32 %v1076_v20, %v1068_v62  ;;  %v1079_v36 = vadd.f32 %v1077_v10, %v1069_v4  ;;  %v1096_v27 = vmul.f32 %v1094_v17, %v2185_v31  ;;  %1971 = vpow2.f32 %v1046_v35 }
 0x852   :  { %v1097_v43 = vmul.f32 %v1095_v61, %v2185_v31  ;;  %vm1043_vm12 = vcmp.gt.f32.partialorder %v1041_v56, 20.0 }
 0x853   :  { %v1088_v42 = vadd.f32 %v1086_v6, %v1078_v34  ;;  %v1089_v26 = vadd.f32 %v1087_v41, %v1079_v36 }
 0x855   :  { %v1098_v37 = vadd.f32 %v1096_v27, %v1088_v42  ;;  %v1099_v45 = vadd.f32 %v1097_v43, %v1089_v26 }
 0x857   :  { %v1100_v27 = vadd.f32 %v1098_v37, %v2271_v16  ;;  %v1101_v26 = vadd.f32 %v1099_v45, %v2271_v16 }
 0x859   :  { %v1102_v43 = vsub.f32 0.0, %v1100_v27 }
 0x85a   :  { %v1970_v28 = vpop.eup %1969 }
 0x85b   :  { %v1048_v40 = vadd.f32 1.0, %v1970_v28  ;;  %v1972_v29 = vpop.eup %1971  ;;  %v1051_v19 = vmul.f32 -0.5, %v1970_v28  ;;  %v1054_v47 = vand.u32 2147483647, %v1970_v28 }
 0x85c   :  { %v1057_v39 = vadd.f32 1.0, %v1972_v29  ;;  %v1060_v4 = vmul.f32 -0.5, %v1972_v29  ;;  %v1063_v58 = vand.u32 2147483647, %v1972_v29 }
 0x85d   :  { %1973 = vlog2.f32 %v1048_v40  ;;  %v1052_v23 = vadd.f32 1.0, %v1051_v19  ;;  %vm1055_vm5 = vcmp.lt.f32.partialorder %v1054_v47, 0.0004427343 }
 0x85e   :  { %1975 = vlog2.f32 %v1057_v39  ;;  %v1061_v50 = vadd.f32 1.0, %v1060_v4  ;;  %vm1064_vm10 = vcmp.lt.f32.partialorder %v1063_v58, 0.0004427343 }
 0x85f   :  { %v1053_v49 = vmul.f32 %v1970_v28, %v1052_v23  ;;  %v1104_v28 = vmul.f32 1.442695, %v1102_v43 }
 0x860   :  { %v1062_v44 = vmul.f32 %v1972_v29, %v1061_v50 }
 0x861   :  { %1977 = vpow2.f32 %v1104_v28 }
 0x867   :  { %v1974_v53 = vpop.eup %1973 }
 0x868   :  { %v1050_v13 = vmul.f32 0.6931472, %v1974_v53  ;;  %v1976_v59 = vpop.eup %1975 }
 0x869   :  { %v1059_v38 = vmul.f32 0.6931472, %v1976_v59 }
 0x86a   :  { %v1056_v31 = vsel %vm1055_vm5, %v1053_v49, %v1050_v13 }
 0x86b   :  { %v2444_v60 = vsel %vm1042_vm8, %v1040_v8, %v1056_v31  ;;  %v1065_v55 = vsel %vm1064_vm10, %v1062_v44, %v1059_v38  ;;  %v1978_v40 = vpop.eup %1977 }
 0x86c   :  { %v1116_v63 = vmul.f32 %v2444_v60, %v2245_v48  ;;  %v2449_v62 = vsel %vm1043_vm12, %v1041_v56, %v1065_v55  ;;  %v1108_v39 = vadd.f32 1.0, %v1978_v40 }
 0x86d   :  { %v1117_v20 = vmul.f32 %v2449_v62, %v2245_v48 }
 0x86e   :  { %1120 = vrot.lane.b32.xlu0 %v1116_v63, %s2080_s6 }
 0x872   :  { %1122 = vrot.lane.b32.xlu0 %v1117_v20, %s2080_s6 }
 0x8e0   :  { %v1121_v10 = vpop.permute.xlu0 %1120 }
 0x8e1   :  { %v1126_v17 = vrot.slane %v1121_v10, 7 }
 0x8e4   :  { %v1123_v8 = vpop.permute.xlu0 %1122 }
 0x8e5   :  { %v1127_v61 = vrot.slane %v1123_v8, 7 }
 0x8e7   :  { %v1129_v34 = vsel %vm345_vm6, %v1127_v61, %v1126_v17  ;;  %v1128_v6 = vsel %vm345_vm6, %v1126_v17, %v1127_v61 }
 0x8e8   :  { %v1130_v35 = vmul.f32 %v1129_v34, %v2188_v32  ;;  %v1131_v56 = vmul.f32 %v1128_v6, %v2192_v33  ;;  %v1103_v32 = vsub.f32 0.0, %v1101_v26 }
 0x8ea   :  { %1134 = vrot.lane.b32.xlu0 %v1130_v35, %s2081_s7  ;;  %1136 = vrot.lane.b32.xlu1 %v1131_v56, %s2081_s7  ;;  %v1106_v33 = vmul.f32 1.442695, %v1103_v32 }
 0x8ec   :  { %1979 = vpow2.f32 %v1106_v33 }
 0x8ed   :  { %1981 = vrcp.f32 %v1108_v39 }
 0x8f6   :  { %v1980_v29 = vpop.eup %1979 }
 0x8f7   :  { %v1109_v19 = vadd.f32 1.0, %v1980_v29  ;;  %v1982_v23 = vpop.eup %1981 }
 0x8f8   :  { %v2472_v58 = vmul.f32 %v1982_v23, %v1100_v27 }
 0x8f9   :  { %1983 = vrcp.f32 %v1109_v19  ;;  %v1917_v19 = vpack.i.bf16 %v2373_v52, %v2371_v5 }
 0x903   :  { %v1984_v53 = vpop.eup %1983 }
 0x904   :  { %v2474_v31 = vmul.f32 %v1984_v53, %v1101_v26 }
 0x906   :  { %v1912_v59 = vpack.i.bf16 %v2474_v31, %v2472_v58 }
 0x95c   :  { %v1135_v48 = vpop.permute.xlu0 %1134  ;;  %v1137_v36 = vpop.permute.xlu1 %1136 }
 0x95d   :  { %v1140_v41 = vadd.f32 %v1135_v48, %v1116_v63  ;;  %v1141_v42 = vadd.f32 %v1137_v36, %v1117_v20 }
 0x95f   :  { %1144 = vrot.lane.b32.xlu0 %v1140_v41, %s2080_s6  ;;  %1146 = vrot.lane.b32.xlu1 %v1141_v42, %s2080_s6 }
 0x9d1   :  { %v1145_v4 = vpop.permute.xlu0 %1144  ;;  %v1147_v47 = vpop.permute.xlu1 %1146 }
 0x9d2   :  { %v1150_v13 = vrot.slane %v1145_v4, 6  ;;  %v1151_v37 = vrot.slane %v1147_v47, 6 }
 0x9d4   :  { %v1153_v16 = vsel %vm360_vm9, %v1151_v37, %v1150_v13  ;;  %v1152_v45 = vsel %vm360_vm9, %v1150_v13, %v1151_v37 }
 0x9d5   :  { %v1154_v49 = vmul.f32 %v1153_v16, %v2217_v51  ;;  %v1155_v50 = vmul.f32 %v1152_v45, %v2226_v54 }
 0x9d7   :  { %1158 = vrot.lane.b32.xlu0 %v1154_v49, %s2081_s7  ;;  %1160 = vrot.lane.b32.xlu1 %v1155_v50, %s2081_s7 }
 0x9db   :  { %1913 = vrot.lane.b32.xlu0 %v1912_v59, %s2082_s8  ;;  %1244 = vrot.lane.b32.xlu1 %v2472_v58, %s2083_s9 }
 0x9df   :  { %1246 = vrot.lane.b32.xlu0 %v2474_v31, %s2083_s9 }
 0xa49   :  { %v1159_v51 = vpop.permute.xlu0 %1158  ;;  %v1161_v54 = vpop.permute.xlu1 %1160 }
 0xa4a   :  { %v1164_v63 = vadd.f32 %v1159_v51, %v1140_v41  ;;  %v1165_v38 = vadd.f32 %v1161_v54, %v1141_v42 }
 0xa4c   :  { %1168 = vrot.lane.b32.xlu1 %v1164_v63, %s2080_s6  ;;  %1170 = vrot.lane.b32.xlu0 %v1165_v38, %s2080_s6 }
 0xa4d   :  { %v1914_v44 = vpop.permute.xlu0 %1913  ;;  %v1245_v55 = vpop.permute.xlu1 %1244 }
 0xa4e   :  { %v1916_v20 = vunpack.i.h.bf16 %v1914_v44  ;;  %v1915_v10 = vunpack.i.l.bf16 %v1914_v44  ;;  %1767 = vmatprep.mubr.msk.f32.mxu1 %vm549_vm14, %v1245_v55 }
 0xa50   :  { %v1854_v8 = vpack.c.bf16 %v1916_v20, %v1915_v10  ;;  %v2001_v20 = vld [vmem:[#allocation5 + $0xa0] sm:$0xff] }
 0xa51   :  { %v1247_v17 = vpop.permute.xlu0 %1246 }
 0xa52   :  { %1856 = vmatprep.subr.msk.bf16.mxu1 %vm2299_vm15, %v1854_v8 }
 0xa53   :  { %1859 = vmatpush3.bf16.xpose.msk.msra.mxu1 %vm2299_vm15, %v1854_v8 }
 0xa5a   :  { %1768 = vmatmul.mubr.msk.f32.vlgmr.msra.gmra.mrb[8].mxu1 %vm549_vm14, %v1247_v17 }
 0xabe   :  { %v1171_v61 = vpop.permute.xlu0 %1170  ;;  %v1169_v34 = vpop.permute.xlu1 %1168 }
 0xabf   :  { %v1175_v6 = vrot.slane %v1171_v61, 4  ;;  %v1174_v35 = vrot.slane %v1169_v34, 4 }
 0xac1   :  { %v1177_v56 = vsel %vm472_vm3, %v1175_v6, %v1174_v35  ;;  %v1176_v48 = vsel %vm472_vm3, %v1174_v35, %v1175_v6 }
 0xac2   :  { %v1178_v36 = vmul.f32 %v1177_v56, %v2312_v24  ;;  %v1179_v41 = vmul.f32 %v1176_v48, %v2315_v25 }
 0xac4   :  { %1182 = vrot.lane.b32.xlu1 %v1178_v36, %s2081_s7  ;;  %1184 = vrot.lane.b32.xlu0 %v1179_v41, %s2081_s7 }
 0xb2d   :  { %v1769_v7 = vpop.f32.mrb[8].mxu1 }
 0xb2e   :  { %v1326_v42 = vpop.f32.mrb[9].mxu1 }
 0xb36   :  { %v1183_v27 = vpop.permute.xlu1 %1182  ;;  %v1185_v26 = vpop.permute.xlu0 %1184 }
 0xb37   :  { %v1188_v43 = vadd.f32 %v1183_v27, %v1164_v63  ;;  %v1189_v32 = vadd.f32 %v1185_v26, %v1165_v38 }
 0xb39   :  { %1192 = vperm.xlu1 %1901, %v1188_v43   ;;  %1197 = vperm.xlu0 %1900, %v1189_v32  }
 0xb3d   :  { %1339 = vperm.xlu1 %1901, %v2444_v60   ;;  %1344 = vperm.xlu0 %1900, %v2449_v62   ;;  %v1927_v60 = vpack.i.bf16 %v2389_v12, %v2387_v11  ;;  %v1922_v62 = vpack.i.bf16 %v2379_v9, %v2377_v22 }
 0xb41   :  { %1918 = vrot.lane.b32.xlu0 %v1917_v19, %s2081_s7 }
 0xb45   :  { %1928 = vrot.lane.b32.xlu0 %v1927_v60, %s2081_s7 }
 0xbb8   :  { %v1193_v28 = vpop.permute.xlu1 %1192  ;;  %v1198_v24 = vpop.permute.xlu0 %1197 }
 0xbb9   :  { %1200 = vxpose.xlu1.b32.start [1/2] (short) (narrow) %v1193_v28, 16 }
 0xbbc   :  { %v1340_v25 = vpop.permute.xlu1 %1339  ;;  %v1345_v33 = vpop.permute.xlu0 %1344 }
 0xbbd   :  { %v1347_v40 = vmul.f32 %v1340_v25, %v2472_v58  ;;  %v1348_v29 = vmul.f32 %v1345_v33, %v2474_v31  ;;  %1201 = vxpose.xlu1.b32.end [2/2] (short) (narrow) %v1198_v24, 16 }
 0xbbf   :  { %v1860_v39 = vpack.c.bf16 %v1348_v29, %v1347_v40 }
 0xbc0   :  { %v1919_v45 = vpop.permute.xlu0 %1918 }
 0xbc1   :  { %1861 = vmatprep.subr.bf16.mxu0 %v1860_v39  ;;  %v1921_v50 = vunpack.i.h.bf16 %v1919_v45  ;;  %v1920_v59 = vunpack.i.l.bf16 %v1919_v45 }
 0xbc2   :  { %1863 = vmatpush3.bf16.msra.mxu0 %v1860_v39 }
 0xbc3   :  { %v1864_v54 = vpack.c.bf16 %v1921_v50, %v1920_v59 }
 0xbc4   :  { %v1929_v38 = vpop.permute.xlu0 %1928 }
 0xbc5   :  { %1865 = vmatprep.subr.bf16.mxu0 %v1864_v54  ;;  %v1930_v44 = vunpack.i.l.bf16 %v1929_v38 }
 0xbdb   :  { %1923 = vrot.lane.b32.xlu1 %v1922_v62, %s2081_s7 }
 0xc39   :  { %v1216_v23 = vpop.trf.xlu1 }
 0xc3a   :  { %v1232_v4 = vsub.f32 %v1193_v28, %v1216_v23 }
 0xc3c   :  { %v1234_v47 = vsel %vm2332_vm11, %v1232_v4, 0.0 }
 0xc3d   :  { %v1236_v53 = vmul.f32 1.442695, %v1234_v47  ;;  %v1217_v13 = vpop.trf.xlu1 }
 0xc3e   :  { %v1233_v5 = vsub.f32 %v1198_v24, %v1217_v13 }
 0xc3f   :  { %1985 = vpow2.f32 %v1236_v53 }
 0xc40   :  { %v1235_v52 = vsel %vm2339_vm1, %v1233_v5, 0.0 }
 0xc41   :  { %v1238_v11 = vmul.f32 1.442695, %v1235_v52 }
 0xc43   :  { %1987 = vpow2.f32 %v1238_v11 }
 0xc49   :  { %v1986_v12 = vpop.eup %1985 }
 0xc4a   :  { %v1240_v22 = vmul.f32 %v1986_v12, %v2348_v21  ;;  %v1931_v21 = vunpack.i.h.bf16 %v1929_v38 }
 0xc4c   :  { %v1335_v9 = vmul.f32 %v1326_v42, %v1240_v22  ;;  %v1872_v55 = vpack.c.bf16 %v1931_v21, %v1930_v44  ;;  %v1350_v42 = vmul.f32 %v2474_v31, %v2361_v46  ;;  %v1932_v31 = vpack.i.bf16 %v2395_v30, %v2393_v18 }
 0xc4d   :  { %v1988_v37 = vpop.eup %1987  ;;  %v1924_v49 = vpop.permute.xlu1 %1923 }
 0xc4e   :  { %1774 = vmatprep.mubr.msk.f32.mxu0 %vm549_vm14, %v1335_v9  ;;  %v1241_v16 = vmul.f32 %v1988_v37, %v2354_v15  ;;  %v1926_v0 = vunpack.i.h.bf16 %v1924_v49  ;;  %v1925_v51 = vunpack.i.l.bf16 %v1924_v49  ;;  %v862_v15 = vsub.s32 6, %v2133_v1 }
 0xc50   :  { %v1336_v57 = vmul.f32 %v1769_v7, %v1241_v16  ;;  %v1868_v63 = vpack.c.bf16 %v1926_v0, %v1925_v51  ;;  %v863_v10 = vrot.slane %v2001_v20, %v862_v15 }
 0xc52   :  { %1775 = vmatmul.mubr.msk.f32.vlgmr.msra.gmra.mrb[6].mxu0 %vm549_vm14, %v1336_v57  ;;  %v958_v8 = vadd.f32 %v2410_v2, %v863_v10  ;;  %v953_v17 = vadd.f32 %v2412_v3, %v863_v10  ;;  %v1349_v3 = vmul.f32 %v2472_v58, %v2361_v46 }
 0xc53   :  { %1867 = vmatpush3.bf16.msra.mxu0 %v1864_v54 }
 0xc54   :  { %1869 = vmatprep.subr.bf16.mxu0 %v1868_v63  ;;  %v1433_v61 = vsub.f32 0.0, %v958_v8  ;;  %v1432_v34 = vsub.f32 0.0, %v953_v17 }
 0xc56   :  { %v1436_v6 = vmul.f32 1.442695, %v1433_v61  ;;  %v1434_v35 = vmul.f32 1.442695, %v1432_v34 }
 0xc57   :  { %1871 = vmatpush3.bf16.msra.mxu0 %v1868_v63 }
 0xc58   :  { %1873 = vmatprep.subr.bf16.mxu0 %v1872_v55  ;;  %1989 = vpow2.f32 %v1436_v6 }
 0xc59   :  { %1991 = vpow2.f32 %v1434_v35 }
 0xc5b   :  { %1875 = vmatpush3.bf16.msra.mxu0 %v1872_v55 }
 0xc62   :  { %v1990_v56 = vpop.eup %1989 }
 0xc63   :  { %v1992_v48 = vpop.eup %1991  ;;  %v1439_v36 = vadd.f32 1.0, %v1990_v56 }
 0xc64   :  { %v1438_v41 = vadd.f32 1.0, %v1992_v48 }
 0xc65   :  { %1993 = vrcp.f32 %v1439_v36 }
 0xc66   :  { %1995 = vrcp.f32 %v1438_v41 }
 0xc6f   :  { %v1994_v7 = vpop.eup %1993 }
 0xc70   :  { %v1996_v1 = vpop.eup %1995  ;;  %v1445_v27 = vmul.f32 %v1994_v7, %v958_v8 }
 0xc71   :  { %v1444_v32 = vmul.f32 %v1996_v1, %v953_v17 }
 0xd25   :  { %v1776_v2 = vpop.f32.mrb[6].mxu0 }
 0xd26   :  { %v1429_v26 = vadd.f32 %v1776_v2, %v1350_v42  ;;  %v1423_v43 = vpop.f32.mrb[7].mxu0 }
 0xd27   :  { %v1424_v28 = vadd.f32 %v1423_v43, %v1349_v3 }
 0xd28   :  { %v1447_v24 = vmul.f32 %v1445_v27, %v1429_v26 }
 0xd29   :  { %v1446_v25 = vmul.f32 %v1444_v32, %v1424_v28 }
 0xd2a   :  { %v1449_v33 = vmul.f32 %v1447_v24, %v1447_v24 }
 0xd2b   :  { %v1448_v29 = vmul.f32 %v1446_v25, %v1446_v25 }
 0xd2c   :  { %v1453_v40 = vsel %vm755_vm2, %v1449_v33, 0.0 }
 0xd2d   :  { %1454 = vadd.xlane.f32.xlu0 %v1453_v40  ;;  %v1450_v39 = vsel %vm755_vm2, %v1448_v29, 0.0 }
 0xd31   :  { %1451 = vadd.xlane.f32.xlu0 %v1450_v39 }
 0xd47   :  { %1933 = vrot.lane.b32.xlu0 %v1932_v31, %s2081_s7 }
 0xd4b   :  { %1498 = vrot.lane.b32.xlu0 %v2154_v14, %s2082_s8 }
 0xdba   :  { %v1455_v46 = vpop.xlane.xlu0 %1454 }
 0xdbb   :  { %v1457_v58 = vmul.f32 0.015625, %v1455_v46 }
 0xdbd   :  { %v1459_v19 = vadd.f32 1e-05, %v1457_v58 }
 0xdbe   :  { %v1452_v60 = vpop.xlane.xlu0 %1451 }
 0xdbf   :  { %v1456_v62 = vmul.f32 0.015625, %v1452_v60  ;;  %1997 = vrsqrt.f32 %v1459_v19 }
 0xdc1   :  { %v1458_v23 = vadd.f32 1e-05, %v1456_v62 }
 0xdc2   :  { %v1934_v4 = vpop.permute.xlu0 %1933 }
 0xdc3   :  { %1999 = vrsqrt.f32 %v1458_v23  ;;  %v1936_v47 = vunpack.i.h.bf16 %v1934_v4  ;;  %v1935_v53 = vunpack.i.l.bf16 %v1934_v4 }
 0xdc5   :  { %v1876_v13 = vpack.c.bf16 %v1936_v47, %v1935_v53 }
 0xdc6   :  { %v1499_v22 = vpop.permute.xlu0 %1498 }
 0xdc7   :  { %1877 = vmatprep.subr.bf16.mxu0 %v1876_v13 }
 0xdc8   :  { %1879 = vmatpush3.bf16.msra.mxu0 %v1876_v13 }
 0xdc9   :  { %v1998_v18 = vpop.eup %1997 }
 0xdca   :  { %v1463_v5 = vmul.f32 %v1998_v18, %v1447_v24 }
 0xdcc   :  { %v1465_v12 = vmul.f32 %v1463_v5, %v2154_v14 }
 0xdcd   :  { %v2000_v30 = vpop.eup %1999 }
 0xdce   :  { %v1462_v52 = vmul.f32 %v2000_v30, %v1446_v25 }
 0xdd0   :  { %v1464_v11 = vmul.f32 %v1462_v52, %v2154_v14 }
 0xdd2   :  { %1793 = vmatprep.mubr.msk.f32.mxu0 %vm755_vm2, %v1464_v11 }
 0xdd3   :  { %1794 = vmatmul.mubr.msk.f32.vlgmr.msra.gmra.mrb[8].mxu0 %vm755_vm2, %v1465_v12 }
 0xea6   :  { %v1795_v9 = vpop.f32.mrb[8].mxu0 }
 0xea7   :  { %v1579_v37 = vadd.f32 %v1795_v9, %v1499_v22  ;;  %v1573_v16 = vpop.f32.mrb[9].mxu0 }
 0xea8   :  { %v1574_v57 = vadd.f32 %v1573_v16, %v1499_v22 }
 0xea9   :  { %1583 = vst.msk [vmem:[#allocation7 + $0x8] sm:$0xff] %vm148_vm0, %v1579_v37 }
 0xeaa   :  { %1582 = vst.msk [vmem:[#allocation7] sm:$0xff] %vm148_vm0, %v1574_v57 }
 0xeab   :  { %2057 = shalt.err (!%p2054_p6)
}
 0xeac   :  { %s2058_s17 = scalar_lea.hbm %s2559_s2, 256 }
 0xead   :  { %p2059_p7 = scmp.ne.s32.totalorder %s2559_s2, %s2058_s17  ;;  %p2062_p8 = scmp.lt.u32.totalorder %s2058_s17, %s2559_s2 }
 0xeaf   :  { %p2064_p9 = pnand %p2062_p8, %p2059_p7 }
 0xeb1   :  { %2067 = shalt.err (!%p2064_p9)
}
 0xeb2   :  { %1595 = dma.vmem_to_hbm [thread:$0]  %s1590_s13, 256, %s2559_s2, [#allocation4], %s2075_s19, %s2075_s19, %s2076_s20  }
 0xeb3   :  { %2072 = dma.done.wait [#allocation4], 256  }
 0xeb4   :  { %2073 = vsyncadd [#allocation4], 4294967040 }
 0xeb5   :  { %1599 = vsyncpa [#allocation3], 1 }
 0xeb6   :  { %1600 = vsyncpa [#allocation6], 1 }
 0xeb7   :  { %1601 = vsyncpa [#allocation4], 1 }

</bundles_post_ra>
